<compile_context>
chip_gen: v7x
topology: tpu7x:2x2x1
jax: 0.10.0
libtpu: 0.0.40
codegen_flags: <defaults>
</compile_context>

<pallas_src>
import functools

import jax
import jax.numpy as jnp
from jax.experimental import pallas as pl
from jax.experimental.pallas import tpu as pltpu


def _convlstm_kernel(p_ref, c_ref, w_ref, b_ref, hc_ref, *, hid_ch, precision):
    # p_ref  : (TILE_HW, 9*C)    fused im2col patches (compute dtype)
    # c_ref  : (TILE_HW, hid)    previous cell state (f32)
    # w_ref  : (9*C, 4*hid)      fused conv weights (compute dtype)
    # b_ref  : (1, 4*hid)        conv bias (f32)
    # hc_ref : (TILE_HW, 2*hid)  fused output [h_next | c_next] (f32)

    # Single MXU contraction for the whole 3x3 conv (K = 9*C), f32 accumulate.
    gates = jnp.dot(p_ref[...], w_ref[...],
                    preferred_element_type=jnp.float32, precision=precision)
    gates = gates + b_ref[...]  # broadcast (1, 4*hid)

    def _sigmoid(v):
        # sigmoid(x) = 0.5 * (tanh(0.5 * x) + 1): one EUP op instead of two.
        return 0.5 * jnp.tanh(0.5 * v) + 0.5

    i = _sigmoid(gates[:, 0 * hid_ch:1 * hid_ch])
    f = _sigmoid(gates[:, 1 * hid_ch:2 * hid_ch])
    o = _sigmoid(gates[:, 2 * hid_ch:3 * hid_ch])
    g = jnp.tanh(gates[:, 3 * hid_ch:4 * hid_ch])

    c_prev = c_ref[...]
    c_next = f * c_prev + i * g
    h_next = o * jnp.tanh(c_next)

    hc_ref[...] = jnp.concatenate([h_next, c_next], axis=-1).astype(hc_ref.dtype)


def _pick_tile_hw(hw, max_tile):
    if hw <= max_tile:
        return hw
    return max(8, (max_tile // 8) * 8)


def convlstm_cell_pallas(x, h, c, weight_oihw, bias, *, hid_ch, kernel_size=3,
                         compute_dtype=jnp.bfloat16, max_tile_hw=1024):
    """Forward pass of ConvLSTMCell.

    Args (PyTorch NCHW conventions):
      x:           (N, in_ch, H, W)
      h, c:        (N, hid_ch, H, W)
      weight_oihw: (4*hid_ch, in_ch+hid_ch, k, k)
      bias:        (4*hid_ch,)
    Returns:
      (h_next, c_next) each (N, hid_ch, H, W), float32.
    """
    assert kernel_size == 3, "this kernel is specialized to 3x3 (padding=1)"
    n, _, height, width = x.shape
    pad = kernel_size // 2
    hw = height * width
    kk = kernel_size * kernel_size

    # --- glue: NCHW -> NHWC, concat, pad, fused im2col on the last axis ---
    combined = jnp.concatenate(
        [jnp.transpose(x, (0, 2, 3, 1)), jnp.transpose(h, (0, 2, 3, 1))], axis=-1
    )  # (N, H, W, C)
    c_tot = combined.shape[-1]
    padded = jnp.pad(combined, ((0, 0), (pad, pad), (pad, pad), (0, 0)))
    taps = [padded[:, ky:ky + height, kx:kx + width, :]
            for ky in range(kernel_size) for kx in range(kernel_size)]
    # Tap-major / channel-minor ordering along the contraction axis.
    patches = jnp.concatenate(taps, axis=-1).reshape(n, hw, kk * c_tot)
    patches = patches.astype(compute_dtype)

    # weights: OIHW -> (ky, kx, in, out) -> (9*C, 4*hid); matches patch order.
    w_flat = jnp.transpose(weight_oihw, (2, 3, 1, 0)).reshape(
        kk * c_tot, 4 * hid_ch).astype(compute_dtype)
    b_flat = bias.reshape(1, 4 * hid_ch).astype(jnp.float32)

    c_flat = jnp.transpose(c, (0, 2, 3, 1)).reshape(n, hw, hid_ch).astype(jnp.float32)

    precision = (jax.lax.Precision.HIGHEST if compute_dtype == jnp.float32
                 else jax.lax.Precision.DEFAULT)
    kernel = functools.partial(_convlstm_kernel, hid_ch=hid_ch, precision=precision)

    tile_hw = _pick_tile_hw(hw, max_tile_hw)
    kc = kk * c_tot
    f4 = 4 * hid_ch

    hc = pl.pallas_call(
        kernel,
        out_shape=jax.ShapeDtypeStruct((n, hw, 2 * hid_ch), jnp.float32),
        grid_spec=pltpu.PrefetchScalarGridSpec(
            num_scalar_prefetch=0,
            grid=(n, pl.cdiv(hw, tile_hw)),
            in_specs=[
                # size-1 batch dim squeezed out of every kernel ref
                pl.BlockSpec((None, tile_hw, kc), lambda b, t: (b, t, 0)),
                pl.BlockSpec((None, tile_hw, hid_ch), lambda b, t: (b, t, 0)),
                # weights / bias: constant index_map -> fetched once, resident
                pl.BlockSpec((kc, f4), lambda b, t: (0, 0)),
                pl.BlockSpec((1, f4), lambda b, t: (0, 0)),
            ],
            out_specs=pl.BlockSpec((None, tile_hw, 2 * hid_ch),
                                   lambda b, t: (b, t, 0)),
        ),
        compiler_params=pltpu.CompilerParams(
            dimension_semantics=("parallel", "parallel")),
    )(patches, c_flat, w_flat, b_flat)

    # --- glue: split fused output, back to NCHW ---
    hc = hc.reshape(n, height, width, 2 * hid_ch)
    h_next = jnp.transpose(hc[..., :hid_ch], (0, 3, 1, 2))
    c_next = jnp.transpose(hc[..., hid_ch:], (0, 3, 1, 2))
    return h_next, c_next


def _reference_forward(x, h, c, weight_oihw, bias, hid_ch):
    combined = jnp.concatenate([x, h], axis=1)
    out = jax.lax.conv_general_dilated(
        combined, weight_oihw, window_strides=(1, 1), padding="SAME",
        dimension_numbers=("NCHW", "OIHW", "NCHW"),
        precision=jax.lax.Precision.HIGHEST,
    ) + bias[None, :, None, None]
    i, f, o, g = jnp.split(out, 4, axis=1)
    i, f, o, g = jax.nn.sigmoid(i), jax.nn.sigmoid(f), jax.nn.sigmoid(o), jnp.tanh(g)
    c_next = f * c + i * g
    h_next = o * jnp.tanh(c_next)
    return h_next, c_next


if __name__ == "__main__":
    in_ch, hid_ch, ksize = 4, 8, 3
    batch, height, width = 2, 16, 16
    c_tot = in_ch + hid_ch

    key = jax.random.PRNGKey(0)
    k_x, k_h, k_c, k_w, k_b = jax.random.split(key, 5)

    x = jax.random.normal(k_x, (batch, in_ch, height, width), jnp.float32)
    h = jax.random.normal(k_h, (batch, hid_ch, height, width), jnp.float32)
    c = jax.random.normal(k_c, (batch, hid_ch, height, width), jnp.float32)

    # Deterministic init mimicking nn.Conv2d default (kaiming-uniform-ish).
    fan_in = c_tot * ksize * ksize
    bound = 1.0 / jnp.sqrt(jnp.float32(fan_in))
    weight = jax.random.uniform(
        k_w, (4 * hid_ch, c_tot, ksize, ksize), jnp.float32, -bound, bound
    )
    bias = jax.random.uniform(k_b, (4 * hid_ch,), jnp.float32, -bound, bound)

    # Fast path: bf16 MXU operands, f32 accumulation (default).
    h_bf, c_bf = convlstm_cell_pallas(
        x, h, c, weight, bias, hid_ch=hid_ch, kernel_size=ksize,
        compute_dtype=jnp.bfloat16)
    # Exact path: f32 operands with Precision.HIGHEST.
    h_f32, c_f32 = convlstm_cell_pallas(
        x, h, c, weight, bias, hid_ch=hid_ch, kernel_size=ksize,
        compute_dtype=jnp.float32)
    jax.block_until_ready((h_bf, c_bf, h_f32, c_f32))

    h_ref, c_ref = _reference_forward(x, h, c, weight, bias, hid_ch)

    assert jnp.allclose(h_f32, h_ref, atol=1e-4, rtol=1e-4), "f32 h_next mismatch"
    assert jnp.allclose(c_f32, c_ref, atol=1e-4, rtol=1e-4), "f32 c_next mismatch"
    assert jnp.allclose(h_bf, h_ref, atol=5e-2, rtol=5e-2), "bf16 h_next mismatch"
    assert jnp.allclose(c_bf, c_ref, atol=5e-2, rtol=5e-2), "bf16 c_next mismatch"

    print("KERNEL_OK")
</pallas_src>

<mosaic_0001>
module attributes {stable_mosaic.version = 11 : i64} {
  func.func @_convlstm_kernel(%arg0: i32, %arg1: i32, %arg2: memref<1x256x108xbf16, #tpu.memory_space<vmem>>, %arg3: memref<1x256x8xf32, #tpu.memory_space<vmem>>, %arg4: memref<108x32xbf16, #tpu.memory_space<vmem>>, %arg5: memref<1x32xf32, #tpu.memory_space<vmem>>, %arg6: memref<1x256x16xf32, #tpu.memory_space<vmem>>) attributes {dimension_semantics = [#tpu.dimension_semantics<parallel>, #tpu.dimension_semantics<parallel>], iteration_bounds = array<i64: 2, 1>, scalar_prefetch = 0 : i64, scratch_operands = 0 : i64, tpu.core_type = #tpu.core_type<tc>, window_params = [{transform_indices = @transform_0, window_bounds = array<i64: 1, 256, 108>}, {transform_indices = @transform_1, window_bounds = array<i64: 1, 256, 8>}, {pipeline_mode = #tpu.pipeline_mode<synchronous>, transform_indices = @transform_2, window_bounds = array<i64: 108, 32>}, {pipeline_mode = #tpu.pipeline_mode<synchronous>, transform_indices = @transform_3, window_bounds = array<i64: 1, 32>}, {transform_indices = @transform_4, window_bounds = array<i64: 1, 256, 16>}]} {
    %c0 = arith.constant 0 : index
    %c0_0 = arith.constant 0 : index
    %c0_1 = arith.constant 0 : index
    %0 = vector.load %arg2[%c0, %c0_0, %c0_1] : memref<1x256x108xbf16, #tpu.memory_space<vmem>>, vector<1x256x108xbf16>
    %1 = vector.shape_cast %0 : vector<1x256x108xbf16> to vector<256x108xbf16>
    %c0_2 = arith.constant 0 : index
    %c0_3 = arith.constant 0 : index
    %2 = vector.load %arg4[%c0_2, %c0_3] : memref<108x32xbf16, #tpu.memory_space<vmem>>, vector<108x32xbf16>
    %cst = arith.constant dense<0.000000e+00> : vector<256x32xf32>
    %3 = tpu.matmul %1, %2, %cst {dimension_numbers = #tpu.dot_dimension_numbers<[1], [0], [0], [1], [0, 0, 1, 1], [], []>} : vector<256x108xbf16>, vector<108x32xbf16>, vector<256x32xf32> -> vector<256x32xf32>
    %c0_4 = arith.constant 0 : index
    %c0_5 = arith.constant 0 : index
    %4 = vector.load %arg5[%c0_4, %c0_5] : memref<1x32xf32, #tpu.memory_space<vmem>>, vector<1x32xf32>
    %5 = vector.broadcast %4 : vector<1x32xf32> to vector<256x32xf32>
    %6 = arith.addf %3, %5 : vector<256x32xf32>
    %7 = vector.extract_strided_slice %6 {offsets = [0, 0], sizes = [256, 8], strides = [1, 1]} : vector<256x32xf32> to vector<256x8xf32>
    %cst_6 = arith.constant 5.000000e-01 : f32
    %8 = vector.broadcast %cst_6 : f32 to vector<256x8xf32>
    %9 = arith.mulf %8, %7 : vector<256x8xf32>
    %10 = math.tanh %9 : vector<256x8xf32>
    %cst_7 = arith.constant 5.000000e-01 : f32
    %11 = vector.broadcast %cst_7 : f32 to vector<256x8xf32>
    %12 = arith.mulf %11, %10 : vector<256x8xf32>
    %cst_8 = arith.constant 5.000000e-01 : f32
    %13 = vector.broadcast %cst_8 : f32 to vector<256x8xf32>
    %14 = arith.addf %12, %13 : vector<256x8xf32>
    %15 = vector.extract_strided_slice %6 {offsets = [0, 8], sizes = [256, 8], strides = [1, 1]} : vector<256x32xf32> to vector<256x8xf32>
    %cst_9 = arith.constant 5.000000e-01 : f32
    %16 = vector.broadcast %cst_9 : f32 to vector<256x8xf32>
    %17 = arith.mulf %16, %15 : vector<256x8xf32>
    %18 = math.tanh %17 : vector<256x8xf32>
    %cst_10 = arith.constant 5.000000e-01 : f32
    %19 = vector.broadcast %cst_10 : f32 to vector<256x8xf32>
    %20 = arith.mulf %19, %18 : vector<256x8xf32>
    %cst_11 = arith.constant 5.000000e-01 : f32
    %21 = vector.broadcast %cst_11 : f32 to vector<256x8xf32>
    %22 = arith.addf %20, %21 : vector<256x8xf32>
    %23 = vector.extract_strided_slice %6 {offsets = [0, 16], sizes = [256, 8], strides = [1, 1]} : vector<256x32xf32> to vector<256x8xf32>
    %cst_12 = arith.constant 5.000000e-01 : f32
    %24 = vector.broadcast %cst_12 : f32 to vector<256x8xf32>
    %25 = arith.mulf %24, %23 : vector<256x8xf32>
    %26 = math.tanh %25 : vector<256x8xf32>
    %cst_13 = arith.constant 5.000000e-01 : f32
    %27 = vector.broadcast %cst_13 : f32 to vector<256x8xf32>
    %28 = arith.mulf %27, %26 : vector<256x8xf32>
    %cst_14 = arith.constant 5.000000e-01 : f32
    %29 = vector.broadcast %cst_14 : f32 to vector<256x8xf32>
    %30 = arith.addf %28, %29 : vector<256x8xf32>
    %31 = vector.extract_strided_slice %6 {offsets = [0, 24], sizes = [256, 8], strides = [1, 1]} : vector<256x32xf32> to vector<256x8xf32>
    %32 = math.tanh %31 : vector<256x8xf32>
    %c0_15 = arith.constant 0 : index
    %c0_16 = arith.constant 0 : index
    %c0_17 = arith.constant 0 : index
    %33 = vector.load %arg3[%c0_15, %c0_16, %c0_17] : memref<1x256x8xf32, #tpu.memory_space<vmem>>, vector<1x256x8xf32>
    %34 = vector.shape_cast %33 : vector<1x256x8xf32> to vector<256x8xf32>
    %35 = arith.mulf %22, %34 : vector<256x8xf32>
    %36 = arith.mulf %14, %32 : vector<256x8xf32>
    %37 = arith.addf %35, %36 : vector<256x8xf32>
    %38 = math.tanh %37 : vector<256x8xf32>
    %39 = arith.mulf %30, %38 : vector<256x8xf32>
    %40 = tpu.concatenate %39, %37 in 1 : vector<256x8xf32>, vector<256x8xf32> -> vector<256x16xf32>
    %c0_18 = arith.constant 0 : index
    %c0_19 = arith.constant 0 : index
    %c0_20 = arith.constant 0 : index
    %41 = vector.load %arg6[%c0_18, %c0_19, %c0_20] : memref<1x256x16xf32, #tpu.memory_space<vmem>>, vector<1x256x16xf32>
    %42 = vector.shape_cast %41 : vector<1x256x16xf32> to vector<256x16xf32>
    %43 = vector.shape_cast %40 : vector<256x16xf32> to vector<1x256x16xf32>
    tpu.vector_store %arg6[%c0_18, %c0_19, %c0_20], %43 {strides = array<i32>} : memref<1x256x16xf32, #tpu.memory_space<vmem>>, vector<1x256x16xf32>,
    return
  }
  func.func @transform_0(%arg0: i32, %arg1: i32) -> (i32, i32, i32) {
    %c0_i32 = arith.constant 0 : i32
    %c0_i32_0 = arith.constant 0 : i32
    return %arg0, %arg1, %c0_i32 : i32, i32, i32
  }
  func.func @transform_1(%arg0: i32, %arg1: i32) -> (i32, i32, i32) {
    %c0_i32 = arith.constant 0 : i32
    %c0_i32_0 = arith.constant 0 : i32
    return %arg0, %arg1, %c0_i32 : i32, i32, i32
  }
  func.func @transform_2(%arg0: i32, %arg1: i32) -> (i32, i32) {
    %c0_i32 = arith.constant 0 : i32
    %c0_i32_0 = arith.constant 0 : i32
    %c0_i32_1 = arith.constant 0 : i32
    return %c0_i32, %c0_i32_0 : i32, i32
  }
  func.func @transform_3(%arg0: i32, %arg1: i32) -> (i32, i32) {
    %c0_i32 = arith.constant 0 : i32
    %c0_i32_0 = arith.constant 0 : i32
    %c0_i32_1 = arith.constant 0 : i32
    return %c0_i32, %c0_i32_0 : i32, i32
  }
  func.func @transform_4(%arg0: i32, %arg1: i32) -> (i32, i32, i32) {
    %c0_i32 = arith.constant 0 : i32
    %c0_i32_0 = arith.constant 0 : i32
    return %arg0, %arg1, %c0_i32 : i32, i32, i32
  }
}

</mosaic_0001>

<bundles_post_ra>
// kernel: tpu_custom_call.1
= control target key start
LH: loop header
LB: loop body
LE: loop exit
PB: predicated region body
PF: predicated region fallthrough
CT: control target
= control target key end

     0   :  { %s2260_s15 = smov 0   ;;  %s2262_s16 = smov 0   ;;  %s3224_s0 = inlined_call_operand.vmem [shape: bf16[2,256,108], index: 0, kind: input, shape index: {}]   ;;  %s3225_s1 = inlined_call_operand.vmem [shape: f32[2,256,8], index: 1, kind: input, shape index: {}]   ;;  %s3226_s2 = inlined_call_operand.vmem [shape: bf16[108,32], index: 2, kind: input, shape index: {}]   ;;  %s3227_s3 = inlined_call_operand.vmem [shape: f32[1,32], index: 3, kind: input, shape index: {}]   ;;  %s3228_s4 = inlined_call_operand.vmem [shape: f32[2,256,16], index: 4, kind: output, shape index: {}]  }
   0x1   :  { %s2264_s17 = smov 0  }
   0x2 LB: > { %s26_s18 = sadd.s32 1, %s2226_s16  ;;  %p1829_p0 = scmp.ge.s32.totalorder %s2230_s17, 1  ;;  %s2230_s17 = sphi %s2264_s17, %s14_s17   ;;  %s2226_s16 = sphi %s2262_s16, %s3304_s16   ;;  %s2222_s15 = sphi %s2260_s15, %s3303_s15  }
   0x3   : > { %p28_p1 = scmp.ge.s32.totalorder %s26_s18, 2  ;;  %p200_p2 = scmp.lt.s32.totalorder %s2230_s17, 3 }
   0x5   : > { %s3306_s18 = smov (%p28_p1, %s26_s18), 0  ;;  %p201_p3 = pnand %p1829_p0, %p200_p2 }
   0x7   : > { %204 = sbr.rel (%p201_p3) target bundleno = 828 (0x33c), region = 36 }
   0xe   : > { %v1993_v0 = vld [vmem:[%s3226_s2] sm:$0xff]   ;;  %v1994_v1 = vld [vmem:[%s3226_s2 + $0x8] sm:$0xff]   ;;  %p244_p4 = scmp.lt.s32.totalorder %s2222_s15, 1  ;;  %v1995_v2 = vld [vmem:[%s3226_s2 + $0x10] sm:$0xff]   ;;  %vm448_vm0 = vcmask 883712   ;;  %vm497_vm1 = vcmask 1045504  }
   0xf   : > { %1904 = vmatprep.subr.bf16.mxu0 %v1993_v0  ;;  %1950 = vmatprep.subr.bf16.mxu1 %v1993_v0  ;;  %v1996_v4 = vld [vmem:[%s3226_s2 + $0x18] sm:$0xff]   ;;  %v1997_v6 = vld [vmem:[%s3226_s2 + $0x20] sm:$0xff]   ;;  %v1998_v7 = vld [vmem:[%s3226_s2 + $0x28] sm:$0xff]   ;;  %s2232_s19 = smov 8   ;;  %s2233_s22 = smov 104   ;;  %vm1654_vm2 = vcmask 64512  }
  0x10   : > { %1905 = vmatpush3.bf16.msra.mxu0 %v1993_v0  ;;  %1957 = vmatpush3.bf16.msra.mxu1 %v1993_v0  ;;  %s3308_s15 = smov (!%p244_p4, %s2222_s15), 1  ;;  %v1999_v8 = vld [vmem:[%s3226_s2 + $0x30] sm:$0x3f]   ;;  %v2414_v56 = vld [vmem:[%s3227_s3] ss:$0 sm:$0xff]  ;;  %s2234_s23 = smov 112  }
  0x11   : > { %1906 = vmatprep.subr.bf16.mxu0 %v1994_v1  ;;  %1951 = vmatprep.subr.bf16.mxu1 %v1994_v1  ;;  %s1878_s25 = sshll.u32 %s3308_s15, 7  ;;  %s1879_s9 = sshll.u32 %s3308_s15, 8  ;;  %v499_v11 = vsel %vm497_vm1, %v1999_v8, 0  ;;  %vm1687_vm3 = vcmask 130048  }
  0x12   : > { %s2293_s28 = scalar_lea.vmem %s3224_s0, %s1878_s25  ;;  %s2317_s14 = scalar_lea.vmem %s3225_s1, %s1879_s9 }
  0x13   : > { %v2000_v3 = vld [vmem:[%s2293_s28] sm:$0xff]   ;;  %v824_v9 = vld [vmem:[%s2317_s14 + $0x10] sm:$0xff]  ;;  %v2001_v12 = vld [vmem:[%s2293_s28 + $0x8] sm:$0xff]   ;;  %s3085_s26 = scalar_lea.vmem %s3228_s4, %s1879_s9 }
  0x14   : > { %1907 = vmatpush3.bf16.msra.mxu0 %v1994_v1  ;;  %1958 = vmatpush3.bf16.msra.mxu1 %v1994_v1  ;;  %v2002_v5 = vld [vmem:[%s2293_s28 + $0x40] sm:$0xff]   ;;  %v2003_v13 = vld [vmem:[%s2293_s28 + $0x48] sm:$0xff]   ;;  %v825_v14 = vld [vmem:[%s2317_s14 + $0x18] sm:$0xff] }
  0x15   : > { %1908 = vmatprep.subr.bf16.mxu0 %v1995_v2  ;;  %1952 = vmatprep.subr.bf16.mxu1 %v1995_v2  ;;  %v822_v10 = vld [vmem:[%s2317_s14] sm:$0xff]  ;;  %v823_v15 = vld [vmem:[%s2317_s14 + $0x8] sm:$0xff]  ;;  %v2004_v16 = vld [vmem:[%s2293_s28 + $0x10] sm:$0xff]  }
  0x16   : > { %1918 = vmatprep.mubr.msk.bf16.mxu0 %vm448_vm0, %v2000_v3  ;;  %1934 = vmatprep.mubr.msk.bf16.mxu1 %vm448_vm0, %v2002_v5  ;;  %v2006_v17 = vld [vmem:[%s2293_s28 + $0x50] sm:$0xff]   ;;  %v827_v18 = vld [vmem:[%s2317_s14 + $0x28] sm:$0xff]  ;;  %v826_v19 = vld [vmem:[%s2317_s14 + $0x20] sm:$0xff] }
  0x17   : > { %890 = vrot.lane.b32.xlu1 %v824_v9, %s2232_s19  ;;  %886 = vrot.lane.b32.xlu0 %v822_v10, %s2232_s19  ;;  %v2005_v20 = vld [vmem:[%s2293_s28 + $0x18] sm:$0xff]   ;;  %v828_v23 = vld [vmem:[%s2317_s14 + $0x30] sm:$0xff] }
  0x18   : > { %1909 = vmatpush3.bf16.msra.mxu0 %v1995_v2  ;;  %1959 = vmatpush3.bf16.msra.mxu1 %v1995_v2  ;;  %v2007_v21 = vld [vmem:[%s2293_s28 + $0x58] sm:$0xff]   ;;  %v2008_v24 = vld [vmem:[%s2293_s28 + $0x20] sm:$0xff]   ;;  %v831_v26 = vld [vmem:[%s2317_s14 + $0x48] sm:$0xff] }
  0x19   : > { %1910 = vmatprep.subr.bf16.mxu0 %v1996_v4  ;;  %1953 = vmatprep.subr.bf16.mxu1 %v1996_v4  ;;  %v829_v22 = vld [vmem:[%s2317_s14 + $0x38] sm:$0xff]  ;;  %v2010_v25 = vld [vmem:[%s2293_s28 + $0x60] sm:$0xff]   ;;  %v2009_v28 = vld [vmem:[%s2293_s28 + $0x28] sm:$0xff]  }
  0x1a   : > { %v830_v27 = vld [vmem:[%s2317_s14 + $0x40] sm:$0xff]  ;;  %v2011_v29 = vld [vmem:[%s2293_s28 + $0x68] sm:$0xff]   ;;  %v833_v30 = vld [vmem:[%s2317_s14 + $0x58] sm:$0xff] }
  0x1b   : > { %892 = vrot.lane.b32.xlu1 %v825_v14, %s2232_s19  ;;  %888 = vrot.lane.b32.xlu0 %v823_v15, %s2232_s19  ;;  %v832_v31 = vld [vmem:[%s2317_s14 + $0x50] sm:$0xff]  ;;  %v835_v34 = vld [vmem:[%s2317_s14 + $0x68] sm:$0xff] }
  0x1c   : > { %1911 = vmatpush3.bf16.msra.mxu0 %v1996_v4  ;;  %1960 = vmatpush3.bf16.msra.mxu1 %v1996_v4  ;;  %v2012_v32 = vld [vmem:[%s2293_s28 + $0x30] sm:$0xff]   ;;  %v834_v35 = vld [vmem:[%s2317_s14 + $0x60] sm:$0xff]  ;;  %v2013_v36 = vld [vmem:[%s2293_s28 + $0x38] sm:$0xff]  }
  0x1d   : > { %1912 = vmatprep.subr.bf16.mxu0 %v1997_v6  ;;  %1954 = vmatprep.subr.bf16.mxu1 %v1997_v6  ;;  %v2014_v33 = vld [vmem:[%s2293_s28 + $0x70] sm:$0xff]   ;;  %v2015_v37 = vld [vmem:[%s2293_s28 + $0x78] sm:$0xff]   ;;  %v839_v40 = vld [vmem:[%s2317_s14 + $0x88] sm:$0xff] }
  0x1e   : > { %v837_v38 = vld [vmem:[%s2317_s14 + $0x78] sm:$0xff]  ;;  %v836_v39 = vld [vmem:[%s2317_s14 + $0x70] sm:$0xff]  ;;  %v838_v41 = vld [vmem:[%s2317_s14 + $0x80] sm:$0xff] }
  0x1f   : > { %896 = vrot.lane.b32.xlu1 %v827_v18, %s2232_s19  ;;  %894 = vrot.lane.b32.xlu0 %v826_v19, %s2232_s19  ;;  %v841_v42 = vld [vmem:[%s2317_s14 + $0x98] sm:$0xff]  ;;  %v840_v43 = vld [vmem:[%s2317_s14 + $0x90] sm:$0xff] }
  0x20   : > { %1913 = vmatpush3.bf16.msra.mxu0 %v1997_v6  ;;  %1961 = vmatpush3.bf16.msra.mxu1 %v1997_v6  ;;  %v843_v44 = vld [vmem:[%s2317_s14 + $0xa8] sm:$0xff]  ;;  %v842_v45 = vld [vmem:[%s2317_s14 + $0xa0] sm:$0xff]  ;;  %v845_v46 = vld [vmem:[%s2317_s14 + $0xb8] sm:$0xff] }
  0x21   : > { %1914 = vmatprep.subr.bf16.mxu0 %v1998_v7  ;;  %1955 = vmatprep.subr.bf16.mxu1 %v1998_v7  ;;  %v844_v47 = vld [vmem:[%s2317_s14 + $0xb0] sm:$0xff]  ;;  %v847_v48 = vld [vmem:[%s2317_s14 + $0xc8] sm:$0xff]  ;;  %v846_v49 = vld [vmem:[%s2317_s14 + $0xc0] sm:$0xff] }
  0x22   : > { %v849_v50 = vld [vmem:[%s2317_s14 + $0xd8] sm:$0xff]  ;;  %v848_v51 = vld [vmem:[%s2317_s14 + $0xd0] sm:$0xff]  ;;  %v851_v52 = vld [vmem:[%s2317_s14 + $0xe8] sm:$0xff] }
  0x23   : > { %900 = vrot.lane.b32.xlu1 %v829_v22, %s2232_s19  ;;  %898 = vrot.lane.b32.xlu0 %v828_v23, %s2232_s19  ;;  %v850_v53 = vld [vmem:[%s2317_s14 + $0xe0] sm:$0xff]  ;;  %v853_v54 = vld [vmem:[%s2317_s14 + $0xf8] sm:$0xff] }
  0x24   : > { %1915 = vmatpush3.bf16.msra.mxu0 %v1998_v7  ;;  %1962 = vmatpush3.bf16.msra.mxu1 %v1998_v7  ;;  %v852_v55 = vld [vmem:[%s2317_s14 + $0xf0] sm:$0xff] }
  0x25   : > { %1964 = vmatprep.subr.msk.bf16.mxu0 %vm497_vm1, %v1999_v8  ;;  %1965 = vmatprep.subr.msk.bf16.mxu1 %vm497_vm1, %v1999_v8 }
  0x27   : > { %904 = vrot.lane.b32.xlu1 %v831_v26, %s2232_s19  ;;  %902 = vrot.lane.b32.xlu0 %v830_v27, %s2232_s19 }
  0x28   : > { %1917 = vmatpush3.bf16.msra.mxu0 %v499_v11  ;;  %1963 = vmatpush3.bf16.msra.mxu1 %v499_v11 }
  0x2b   : > { %1919 = vmatmul.mubr.msk.bf16.vlgmr.msra.gmra.mrb[0].mxu0 %vm448_vm0, %v2001_v12  ;;  %1935 = vmatmul.mubr.msk.bf16.vlgmr.msra.gmra.mrb[0].mxu1 %vm448_vm0, %v2003_v13 }
  0x2c   : > { %1922 = vmatprep.mubr.msk.bf16.mxu0 %vm448_vm0, %v2004_v16  ;;  %1938 = vmatprep.mubr.msk.bf16.mxu1 %vm448_vm0, %v2006_v17 }
  0x2d   : > { %908 = vrot.lane.b32.xlu1 %v833_v30, %s2232_s19  ;;  %906 = vrot.lane.b32.xlu0 %v832_v31, %s2232_s19 }
  0x31   : > { %912 = vrot.lane.b32.xlu1 %v835_v34, %s2232_s19  ;;  %910 = vrot.lane.b32.xlu0 %v834_v35, %s2232_s19 }
  0x33   : > { %1923 = vmatmul.mubr.msk.bf16.gmra.mrb[4].mxu0 %vm448_vm0, %v2005_v20  ;;  %1939 = vmatmul.mubr.msk.bf16.gmra.mrb[4].mxu1 %vm448_vm0, %v2007_v21 }
  0x34   : > { %1926 = vmatprep.mubr.msk.bf16.mxu0 %vm448_vm0, %v2008_v24  ;;  %1942 = vmatprep.mubr.msk.bf16.mxu1 %vm448_vm0, %v2010_v25 }
  0x35   : > { %916 = vrot.lane.b32.xlu1 %v837_v38, %s2232_s19  ;;  %914 = vrot.lane.b32.xlu0 %v836_v39, %s2232_s19 }
  0x39   : > { %920 = vrot.lane.b32.xlu1 %v839_v40, %s2232_s19  ;;  %918 = vrot.lane.b32.xlu0 %v838_v41, %s2232_s19 }
  0x3b   : > { %1927 = vmatmul.mubr.msk.bf16.gmra.mrb[8].mxu0 %vm448_vm0, %v2009_v28  ;;  %1943 = vmatmul.mubr.msk.bf16.gmra.mrb[8].mxu1 %vm448_vm0, %v2011_v29 }
  0x3c   : > { %1930 = vmatprep.mubr.msk.bf16.mxu0 %vm448_vm0, %v2012_v32  ;;  %1946 = vmatprep.mubr.msk.bf16.mxu1 %vm448_vm0, %v2014_v33 }
  0x3d   : > { %924 = vrot.lane.b32.xlu1 %v841_v42, %s2232_s19  ;;  %922 = vrot.lane.b32.xlu0 %v840_v43, %s2232_s19 }
  0x41   : > { %928 = vrot.lane.b32.xlu1 %v843_v44, %s2232_s19  ;;  %926 = vrot.lane.b32.xlu0 %v842_v45, %s2232_s19 }
  0x43   : > { %1931 = vmatmul.mubr.msk.bf16.gmra.mrb[12].mxu0 %vm448_vm0, %v2013_v36  ;;  %1947 = vmatmul.mubr.msk.bf16.gmra.mrb[12].mxu1 %vm448_vm0, %v2015_v37 }
  0x45   : > { %932 = vrot.lane.b32.xlu1 %v845_v46, %s2232_s19  ;;  %930 = vrot.lane.b32.xlu0 %v844_v47, %s2232_s19 }
  0x49   : > { %936 = vrot.lane.b32.xlu1 %v847_v48, %s2232_s19  ;;  %934 = vrot.lane.b32.xlu0 %v846_v49, %s2232_s19 }
  0x4d   : > { %940 = vrot.lane.b32.xlu1 %v849_v50, %s2232_s19  ;;  %938 = vrot.lane.b32.xlu0 %v848_v51, %s2232_s19 }
  0x51   : > { %944 = vrot.lane.b32.xlu1 %v851_v52, %s2232_s19  ;;  %942 = vrot.lane.b32.xlu0 %v850_v53, %s2232_s19 }
  0x55   : > { %948 = vrot.lane.b32.xlu1 %v853_v54, %s2232_s19  ;;  %946 = vrot.lane.b32.xlu0 %v852_v55, %s2232_s19 }
  0xfe   : > { %v1920_v57 = vpop.f32.mrb[0].mxu0  ;;  %v1936_v58 = vpop.f32.mrb[0].mxu1 }
  0xff   : > { %v2417_v59 = vadd.f32 %v1920_v57, %v2414_v56  ;;  %v535_v60 = vpop.f32.mrb[1].mxu0  ;;  %v599_v61 = vpop.f32.mrb[1].mxu1  ;;  %v2421_v2 = vadd.f32 %v1936_v58, %v2414_v56 }
 0x100   : > { %v1921_v62 = vpop.f32.mrb[2].mxu0  ;;  %v1937_v63 = vpop.f32.mrb[2].mxu1  ;;  %v2427_v4 = vadd.f32 %v2414_v56, %v535_v60  ;;  %v2432_v11 = vadd.f32 %v2414_v56, %v599_v61 }
 0x101   : > { %2016 = vtanh.f32 %v2417_v59  ;;  %v538_v0 = vpop.f32.mrb[3].mxu0  ;;  %v602_v1 = vpop.f32.mrb[3].mxu1  ;;  %v2424_v3 = vadd.f32 %v1921_v62, %v2414_v56  ;;  %v2436_v14 = vadd.f32 %v1937_v63, %v2414_v56 }
 0x102   : > { %2018 = vtanh.f32 %v2421_v2  ;;  %v2441_v16 = vadd.f32 %v2414_v56, %v538_v0  ;;  %v2458_v28 = vadd.f32 %v2414_v56, %v602_v1  ;;  %v2522_v58 = vpop.permute.xlu0 %886 }
 0x103   : > { %2020 = vtanh.f32 %v2424_v3 }
 0x104   : > { %2022 = vtanh.f32 %v2427_v4 }
 0x105   : > { %2024 = vtanh.f32 %v2432_v11 }
 0x106   : > { %v1924_v5 = vpop.f32.mrb[4].mxu0  ;;  %v1940_v6 = vpop.f32.mrb[4].mxu1  ;;  %2026 = vtanh.f32 %v2436_v14 }
 0x107   : > { %v551_v7 = vpop.f32.mrb[5].mxu0  ;;  %v615_v8 = vpop.f32.mrb[5].mxu1  ;;  %v2445_v17 = vadd.f32 %v1924_v5, %v2414_v56  ;;  %2028 = vtanh.f32 %v2441_v16  ;;  %v2468_v31 = vadd.f32 %v1940_v6, %v2414_v56 }
 0x108   : > { %v1925_v9 = vpop.f32.mrb[6].mxu0  ;;  %v1941_v10 = vpop.f32.mrb[6].mxu1  ;;  %v2479_v40 = vadd.f32 %v2414_v56, %v551_v7  ;;  %v2501_v49 = vadd.f32 %v2414_v56, %v615_v8 }
 0x109   : > { %v554_v12 = vpop.f32.mrb[7].mxu0  ;;  %v618_v13 = vpop.f32.mrb[7].mxu1  ;;  %2030 = vtanh.f32 %v2445_v17  ;;  %v2463_v30 = vadd.f32 %v1925_v9, %v2414_v56  ;;  %v2486_v43 = vadd.f32 %v1941_v10, %v2414_v56 }
 0x10a   : > { %2032 = vtanh.f32 %v2458_v28  ;;  %v2496_v48 = vadd.f32 %v2414_v56, %v554_v12  ;;  %v2514_v53 = vadd.f32 %v2414_v56, %v618_v13  ;;  %v2539_v6 = vpop.permute.xlu0 %888  ;;  %v2541_v7 = vpop.permute.xlu1 %890 }
 0x10b   : > { %v2017_v15 = vpop.eup %2016  ;;  %2034 = vtanh.f32 %v2463_v30 }
 0x10c   : > { %1050 = vrot.lane.b32.xlu0 %v2017_v15, %s2233_s22  ;;  %v2019_v22 = vpop.eup %2018  ;;  %2036 = vtanh.f32 %v2468_v31 }
 0x10d   : > { %v2021_v27 = vpop.eup %2020  ;;  %2038 = vtanh.f32 %v2479_v40 }
 0x10e   : > { %v1928_v18 = vpop.f32.mrb[8].mxu0  ;;  %v1944_v19 = vpop.f32.mrb[8].mxu1  ;;  %1052 = vrot.lane.b32.xlu1 %v2021_v27, %s2233_s22  ;;  %2040 = vtanh.f32 %v2486_v43 }
 0x10f   : > { %v567_v20 = vpop.f32.mrb[9].mxu0  ;;  %v2447_v21 = vpop.f32.mrb[9].mxu1  ;;  %v2508_v52 = vadd.f32 %v1928_v18, %v2414_v56  ;;  %2042 = vtanh.f32 %v2496_v48  ;;  %v2526_v60 = vadd.f32 %v1944_v19, %v2414_v56 }
 0x110   : > { %v1929_v23 = vpop.f32.mrb[10].mxu0  ;;  %v2449_v24 = vpop.f32.mrb[10].mxu1  ;;  %1082 = vrot.lane.b32.xlu0 %v2019_v22, %s2233_s22  ;;  %2044 = vtanh.f32 %v2501_v49  ;;  %v2529_v63 = vadd.f32 %v2414_v56, %v567_v20  ;;  %v2552_v10 = vadd.f32 %v2414_v56, %v2447_v21 }
 0x111   : > { %v2453_v25 = vpop.f32.mrb[11].mxu0  ;;  %v2455_v26 = vpop.f32.mrb[11].mxu1  ;;  %2046 = vtanh.f32 %v2508_v52  ;;  %v2518_v57 = vadd.f32 %v1929_v23, %v2414_v56  ;;  %v2537_v0 = vadd.f32 %v2449_v24, %v2414_v56 }
 0x112   : > { %v2023_v29 = vpop.eup %2022  ;;  %2048 = vtanh.f32 %v2514_v53  ;;  %v2546_v8 = vadd.f32 %v2414_v56, %v2453_v25  ;;  %v2561_v15 = vpop.permute.xlu0 %894  ;;  %v2566_v18 = vadd.f32 %v2414_v56, %v2455_v26 }
 0x113   : > { %v2025_v34 = vpop.eup %2024  ;;  %2050 = vtanh.f32 %v2518_v57  ;;  %v2568_v20 = vpop.permute.xlu1 %892 }
 0x114   : > { %1046 = vrot.lane.b32.xlu0 %v2023_v29, %s2233_s22  ;;  %v2027_v37 = vpop.eup %2026  ;;  %2052 = vtanh.f32 %v2526_v60 }
 0x115   : > { %1084 = vrot.lane.b32.xlu1 %v2027_v37, %s2233_s22  ;;  %v2029_v44 = vpop.eup %2028  ;;  %2054 = vtanh.f32 %v2529_v63 }
 0x116   : > { %v1932_v32 = vpop.f32.mrb[12].mxu0  ;;  %v2470_v33 = vpop.f32.mrb[12].mxu1  ;;  %2056 = vtanh.f32 %v2537_v0 }
 0x117   : > { %v2472_v35 = vpop.f32.mrb[13].mxu0  ;;  %v647_v36 = vpop.f32.mrb[13].mxu1  ;;  %v2556_v13 = vadd.f32 %v1932_v32, %v2414_v56  ;;  %2058 = vtanh.f32 %v2546_v8  ;;  %v2580_v23 = vadd.f32 %v2470_v33, %v2414_v56 }
 0x118   : > { %v2474_v38 = vpop.f32.mrb[14].mxu0  ;;  %v2476_v39 = vpop.f32.mrb[14].mxu1  ;;  %1078 = vrot.lane.b32.xlu0 %v2025_v34, %s2233_s22  ;;  %v2492_v46 = vadd.f32 %v2414_v56, %v647_v36  ;;  %2060 = vtanh.f32 %v2552_v10  ;;  %v2588_v29 = vadd.f32 %v2414_v56, %v2472_v35 }
 0x119   : > { %v586_v41 = vpop.f32.mrb[15].mxu0  ;;  %v650_v42 = vpop.f32.mrb[15].mxu1  ;;  %1048 = vrot.lane.b32.xlu1 %v2029_v44, %s2233_s22  ;;  %v2573_v22 = vadd.f32 %v2474_v38, %v2414_v56  ;;  %v2596_v32 = vadd.f32 %v2476_v39, %v2414_v56 }
 0x11a   : > { %v2489_v45 = vadd.f32 %v2414_v56, %v586_v41  ;;  %v2031_v47 = vpop.eup %2030  ;;  %v2505_v50 = vadd.f32 %v2414_v56, %v650_v42  ;;  %2062 = vtanh.f32 %v2556_v13  ;;  %v2582_v26 = vpop.permute.xlu0 %898 }
 0x11b   : > { %v2033_v51 = vpop.eup %2032  ;;  %2064 = vtanh.f32 %v2566_v18  ;;  %v2584_v27 = vpop.permute.xlu1 %896 }
 0x11c   : > { %1058 = vrot.lane.b32.xlu0 %v2031_v47, %s2233_s22  ;;  %v2035_v54 = vpop.eup %2034  ;;  %2066 = vtanh.f32 %v2573_v22 }
 0x11d   : > { %1080 = vrot.lane.b32.xlu1 %v2033_v51, %s2233_s22  ;;  %v2037_v55 = vpop.eup %2036  ;;  %2068 = vtanh.f32 %v2580_v23 }
 0x11e   : > { %v2039_v61 = vpop.eup %2038  ;;  %2070 = vtanh.f32 %v2588_v29  ;;  %v2601_v36 = vpop.permute.xlu0 %902 }
 0x11f   : > { %v2041_v62 = vpop.eup %2040  ;;  %2072 = vtanh.f32 %v2596_v32  ;;  %v2604_v37 = vpop.permute.xlu1 %900 }
 0x120   : > { %1090 = vrot.lane.b32.xlu0 %v2037_v55, %s2233_s22  ;;  %v2043_v1 = vpop.eup %2042  ;;  %2074 = vtanh.f32 %v2489_v45 }
 0x121   : > { %1060 = vrot.lane.b32.xlu1 %v2035_v54, %s2233_s22  ;;  %v2045_v5 = vpop.eup %2044  ;;  %2076 = vtanh.f32 %v2492_v46 }
 0x122   : > { %v2047_v9 = vpop.eup %2046  ;;  %v2610_v41 = vpop.permute.xlu0 %906  ;;  %2078 = vtanh.f32 %v2505_v50 }
 0x123   : > { %v2049_v12 = vpop.eup %2048  ;;  %v2612_v42 = vpop.permute.xlu1 %904 }
 0x124   : > { %1054 = vrot.lane.b32.xlu0 %v2039_v61, %s2233_s22  ;;  %v2051_v19 = vpop.eup %2050  ;;  %3249 = vst [vmem:[#allocation2_spill] sm:$0xff] %v2612_v42 }
 0x125   : > { %1092 = vrot.lane.b32.xlu1 %v2041_v62, %s2233_s22  ;;  %v2053_v21 = vpop.eup %2052 }
 0x126   : > { %v2055_v24 = vpop.eup %2054  ;;  %v2619_v51 = vpop.permute.xlu0 %910 }
 0x127   : > { %v2057_v25 = vpop.eup %2056  ;;  %3250 = vst [vmem:[#allocation3_spill] sm:$0xff] %v2619_v51  ;;  %v2621_v55 = vpop.permute.xlu1 %908 }
 0x128   : > { %1086 = vrot.lane.b32.xlu0 %v2045_v5, %s2233_s22  ;;  %v2059_v33 = vpop.eup %2058 }
 0x129   : > { %1056 = vrot.lane.b32.xlu1 %v2043_v1, %s2233_s22  ;;  %v2061_v34 = vpop.eup %2060 }
 0x12a   : > { %v2063_v35 = vpop.eup %2062  ;;  %v2625_v1 = vpop.permute.xlu0 %914 }
 0x12b   : > { %v2065_v38 = vpop.eup %2064  ;;  %3251 = vst [vmem:[#allocation4_spill] sm:$0xff] %v2625_v1  ;;  %v2627_v5 = vpop.permute.xlu1 %912 }
 0x12c   : > { %1066 = vrot.lane.b32.xlu0 %v2047_v9, %s2233_s22  ;;  %v2067_v56 = vpop.eup %2066  ;;  %3252 = vst [vmem:[#allocation5_spill] sm:$0xff] %v2627_v5 }
 0x12d   : > { %1088 = vrot.lane.b32.xlu1 %v2049_v12, %s2233_s22  ;;  %v2069_v39 = vpop.eup %2068 }
 0x12e   : > { %v2071_v44 = vpop.eup %2070  ;;  %v2630_v9 = vpop.permute.xlu0 %918 }
 0x12f   : > { %v2073_v47 = vpop.eup %2072  ;;  %v2632_v12 = vpop.permute.xlu1 %916 }
 0x130   : > { %1098 = vrot.lane.b32.xlu0 %v2053_v21, %s2233_s22  ;;  %v2075_v54 = vpop.eup %2074  ;;  %3253 = vst [vmem:[#allocation6_spill] sm:$0xff] %v2632_v12 }
 0x131   : > { %1068 = vrot.lane.b32.xlu1 %v2051_v19, %s2233_s22  ;;  %v2077_v61 = vpop.eup %2076 }
 0x132   : > { %v2079_v62 = vpop.eup %2078  ;;  %v2634_v19 = vpop.permute.xlu0 %922 }
 0x133   : > { %v2636_v21 = vpop.permute.xlu1 %920 }
 0x134   : > { %1062 = vrot.lane.b32.xlu0 %v2055_v24, %s2233_s22 }
 0x135   : > { %1100 = vrot.lane.b32.xlu1 %v2057_v25, %s2233_s22 }
 0x136   : > { %v2638_v24 = vpop.permute.xlu0 %926 }
 0x137   : > { %v2640_v25 = vpop.permute.xlu1 %924 }
 0x138   : > { %1094 = vrot.lane.b32.xlu0 %v2061_v34, %s2233_s22 }
 0x139   : > { %1064 = vrot.lane.b32.xlu1 %v2059_v33, %s2233_s22 }
 0x13a   : > { %v2642_v33 = vpop.permute.xlu0 %930 }
 0x13b   : > { %v2644_v34 = vpop.permute.xlu1 %928 }
 0x13c   : > { %1074 = vrot.lane.b32.xlu0 %v2063_v35, %s2233_s22  ;;  %v664_v35 = vmul.f32 0.5, %v2417_v59 }
 0x13d   : > { %1096 = vrot.lane.b32.xlu1 %v2065_v38, %s2233_s22 }
 0x13e   : > { %v2647_v38 = vpop.permute.xlu0 %934  ;;  %2080 = vtanh.f32 %v664_v35  ;;  %v681_v35 = vmul.f32 0.5, %v2436_v14 }
 0x13f   : > { %3254 = vst [vmem:[#allocation7_spill] sm:$0xff] %v2647_v38 }
 0x140   : > { %1106 = vrot.lane.b32.xlu0 %v2069_v39, %s2233_s22  ;;  %v2650_v39 = vpop.permute.xlu1 %932 }
 0x141   : > { %1076 = vrot.lane.b32.xlu1 %v2067_v56, %s2233_s22  ;;  %v680_v56 = vmul.f32 0.5, %v2421_v2 }
 0x143   : > { %2082 = vtanh.f32 %v680_v56 }
 0x144   : > { %1070 = vrot.lane.b32.xlu0 %v2071_v44, %s2233_s22  ;;  %v665_v44 = vmul.f32 0.5, %v2424_v3  ;;  %v663_v3 = vmul.f32 0.5, %v2441_v16 }
 0x145   : > { %1108 = vrot.lane.b32.xlu1 %v2073_v47, %s2233_s22  ;;  %v2653_v47 = vpop.permute.xlu0 %938 }
 0x146   : > { %2084 = vtanh.f32 %v665_v44 }
 0x148   : > { %1102 = vrot.lane.b32.xlu0 %v2077_v61, %s2233_s22  ;;  %v2656_v61 = vpop.permute.xlu1 %936  ;;  %v2081_v2 = vpop.eup %2080 }
 0x149   : > { %1072 = vrot.lane.b32.xlu1 %v2075_v54, %s2233_s22  ;;  %v662_v54 = vmul.f32 0.5, %v2427_v4  ;;  %3255 = vst [vmem:[#allocation8_spill] sm:$0xff] %v2656_v61  ;;  %v2659_v59 = vpop.permute.xlu0 %942  ;;  %v728_v51 = vmul.f32 0.5, %v2081_v2  ;;  %v668_v4 = vmul.f32 0.5, %v2445_v17  ;;  %v669_v17 = vmul.f32 0.5, %v2463_v30 }
 0x14a   : > { %3256 = vst [vmem:[#allocation9_spill] sm:$0xff] %v2659_v59  ;;  %v684_v2 = vmul.f32 0.5, %v2468_v31  ;;  %v685_v31 = vmul.f32 0.5, %v2486_v43  ;;  %v682_v43 = vmul.f32 0.5, %v2501_v49  ;;  %v672_v49 = vmul.f32 0.5, %v2508_v52 }
 0x14b   : > { %2086 = vtanh.f32 %v662_v54  ;;  %v679_v54 = vmul.f32 0.5, %v2458_v28  ;;  %v2671_v14 = vadd.f32 0.5, %v728_v51 }
 0x14c   : > { %v2662_v5 = vpop.permute.xlu1 %940 }
 0x14d   : > { %1104 = vrot.lane.b32.xlu1 %v2079_v62, %s2233_s22  ;;  %v678_v62 = vmul.f32 0.5, %v2432_v11  ;;  %v2666_v56 = vpop.permute.xlu0 %946  ;;  %v2083_v44 = vpop.eup %2082 }
 0x14e   : > { %3257 = vst [vmem:[#allocation10_spill] sm:$0xff] %v2666_v56  ;;  %v744_v59 = vmul.f32 0.5, %v2083_v44 }
 0x14f   : > { %2088 = vtanh.f32 %v678_v62 }
 0x150   : > { %2090 = vtanh.f32 %v681_v35  ;;  %v2668_v12 = vpop.permute.xlu1 %944  ;;  %v2085_v11 = vpop.eup %2084 }
 0x151   : > { %3258 = vst [vmem:[#allocation11_spill] sm:$0xff] %v2668_v12  ;;  %2092 = vtanh.f32 %v663_v3  ;;  %v729_v35 = vmul.f32 0.5, %v2085_v11  ;;  %v666_v12 = vmul.f32 0.5, %v2479_v40 }
 0x152   : > { %2094 = vtanh.f32 %v668_v4  ;;  %v2679_v4 = vadd.f32 0.5, %v744_v59 }
 0x153   : > { %2096 = vtanh.f32 %v679_v54 }
 0x154   : > { %v2676_v56 = vpop.permute.xlu1 %948  ;;  %2098 = vtanh.f32 %v669_v17 }
 0x155   : > { %v2087_v1 = vpop.eup %2086  ;;  %3259 = vst [vmem:[#allocation12_spill] sm:$0xff] %v2676_v56  ;;  %2100 = vtanh.f32 %v684_v2 }
 0x156   : > { %v726_v28 = vmul.f32 0.5, %v2087_v1  ;;  %2102 = vtanh.f32 %v666_v12 }
 0x157   : > { %2104 = vtanh.f32 %v685_v31 }
 0x158   : > { %v2688_v59 = vadd.f32 0.5, %v726_v28 }
 0x159   : > { %v2089_v3 = vpop.eup %2088 }
 0x15a   : > { %v2091_v51 = vpop.eup %2090  ;;  %v742_v56 = vmul.f32 0.5, %v2089_v3 }
 0x15b   : > { %v2093_v54 = vpop.eup %2092 }
 0x15c   : > { %v2095_v61 = vpop.eup %2094  ;;  %v727_v2 = vmul.f32 0.5, %v2093_v54 }
 0x15d   : > { %v732_v3 = vmul.f32 0.5, %v2095_v61  ;;  %v2097_v28 = vpop.eup %2096 }
 0x15e   : > { %v2099_v61 = vpop.eup %2098  ;;  %v2704_v31 = vadd.f32 0.5, %v727_v2 }
 0x15f   : > { %v2707_v54 = vadd.f32 0.5, %v732_v3  ;;  %v733_v2 = vmul.f32 0.5, %v2099_v61 }
 0x17e   : > { %v1051_v62 = vpop.permute.xlu0 %1050 }
 0x17f   : > { %v1144_v16 = vmul.f32 %v1051_v62, %v2671_v14  ;;  %v2682_v62 = vadd.f32 0.5, %v729_v35  ;;  %v667_v35 = vmul.f32 0.5, %v2496_v48  ;;  %v683_v48 = vmul.f32 0.5, %v2514_v53 }
 0x180   : > { %v1053_v11 = vpop.permute.xlu1 %1052 }
 0x181   : > { %1210 = vrot.lane.b32.xlu0 %v1144_v16, %s2232_s19  ;;  %v745_v16 = vmul.f32 0.5, %v2091_v51  ;;  %v1145_v1 = vmul.f32 %v1053_v11, %v2682_v62  ;;  %v2694_v51 = vadd.f32 0.5, %v742_v56  ;;  %2106 = vtanh.f32 %v667_v35 }
 0x182   : > { %v1083_v44 = vpop.permute.xlu0 %1082  ;;  %2108 = vtanh.f32 %v682_v43  ;;  %v743_v56 = vmul.f32 0.5, %v2097_v28  ;;  %v673_v35 = vmul.f32 0.5, %v2518_v57  ;;  %v688_v43 = vmul.f32 0.5, %v2526_v60 }
 0x183   : > { %v1160_v30 = vmul.f32 %v1083_v44, %v2679_v4  ;;  %1212 = vrot.lane.b32.xlu1 %v1145_v1, %s2232_s19  ;;  %v2696_v44 = vadd.f32 0.5, %v745_v16  ;;  %v2101_v16 = vpop.eup %2100  ;;  %2110 = vtanh.f32 %v683_v48  ;;  %v670_v57 = vmul.f32 0.5, %v2529_v63 }
 0x184   : > { %2112 = vtanh.f32 %v672_v49  ;;  %v2103_v28 = vpop.eup %2102  ;;  %v671_v63 = vmul.f32 0.5, %v2546_v8 }
 0x185   : > { %1242 = vrot.lane.b32.xlu0 %v1160_v30, %s2232_s19  ;;  %v2105_v3 = vpop.eup %2104  ;;  %2114 = vtanh.f32 %v673_v35  ;;  %v730_v49 = vmul.f32 0.5, %v2103_v28 }
 0x186   : > { %v1047_v40 = vpop.permute.xlu0 %1046  ;;  %2116 = vtanh.f32 %v688_v43  ;;  %v749_v61 = vmul.f32 0.5, %v2105_v3 }
 0x187   : > { %v1142_v17 = vmul.f32 %v1047_v40, %v2688_v59  ;;  %v1085_v30 = vpop.permute.xlu1 %1084  ;;  %2118 = vtanh.f32 %v670_v57 }
 0x188   : > { %v1161_v11 = vmul.f32 %v1085_v30, %v2696_v44  ;;  %v748_v30 = vmul.f32 0.5, %v2101_v16  ;;  %v2729_v3 = vadd.f32 0.5, %v749_v61 }
 0x189   : > { %1206 = vrot.lane.b32.xlu0 %v1142_v17, %s2232_s19 }
 0x18a   : > { %v1079_v12 = vpop.permute.xlu0 %1078  ;;  %1244 = vrot.lane.b32.xlu1 %v1161_v11, %s2232_s19  ;;  %v2720_v16 = vadd.f32 0.5, %v748_v30 }
 0x18b   : > { %v1158_v1 = vmul.f32 %v1079_v12, %v2694_v51  ;;  %v1049_v40 = vpop.permute.xlu1 %1048  ;;  %v2713_v12 = vadd.f32 0.5, %v743_v56  ;;  %v2107_v60 = vpop.eup %2106  ;;  %v2723_v56 = vadd.f32 0.5, %v733_v2  ;;  %v2733_v2 = vadd.f32 0.5, %v730_v49 }
 0x18c   : > { %v1143_v17 = vmul.f32 %v1049_v40, %v2704_v31  ;;  %v2109_v40 = vpop.eup %2108  ;;  %v731_v28 = vmul.f32 0.5, %v2107_v60  ;;  %v676_v60 = vmul.f32 0.5, %v2556_v13  ;;  %v677_v13 = vmul.f32 0.5, %v2573_v22 }
 0x18d   : > { %1238 = vrot.lane.b32.xlu0 %v1158_v1, %s2232_s19  ;;  %v689_v1 = vmul.f32 0.5, %v2537_v0  ;;  %v686_v0 = vmul.f32 0.5, %v2552_v10  ;;  %v2111_v43 = vpop.eup %2110  ;;  %v746_v30 = vmul.f32 0.5, %v2109_v40  ;;  %v674_v22 = vmul.f32 0.5, %v2588_v29 }
 0x18e   : > { %v1059_v53 = vpop.permute.xlu0 %1058  ;;  %1208 = vrot.lane.b32.xlu1 %v1143_v17, %s2232_s19  ;;  %v747_v40 = vmul.f32 0.5, %v2111_v43  ;;  %v2742_v49 = vadd.f32 0.5, %v731_v28 }
 0x18f   : > { %v1148_v52 = vmul.f32 %v1059_v53, %v2707_v54  ;;  %v1081_v48 = vpop.permute.xlu1 %1080  ;;  %2120 = vtanh.f32 %v689_v1 }
 0x190   : > { %v1159_v11 = vmul.f32 %v1081_v48, %v2713_v12  ;;  %v2113_v48 = vpop.eup %2112  ;;  %2122 = vtanh.f32 %v671_v63 }
 0x191   : > { %1218 = vrot.lane.b32.xlu0 %v1148_v52, %s2232_s19  ;;  %2124 = vtanh.f32 %v686_v0  ;;  %v2115_v61 = vpop.eup %2114 }
 0x192   : > { %1240 = vrot.lane.b32.xlu1 %v1159_v11, %s2232_s19  ;;  %v1091_v17 = vpop.permute.xlu0 %1090  ;;  %v687_v11 = vmul.f32 0.5, %v2566_v18  ;;  %v2117_v63 = vpop.eup %2116 }
 0x193   : > { %v1061_v53 = vpop.permute.xlu1 %1060  ;;  %v1164_v52 = vmul.f32 %v1091_v17, %v2720_v16  ;;  %v2739_v17 = vadd.f32 0.5, %v746_v30  ;;  %v2119_v43 = vpop.eup %2118  ;;  %v737_v30 = vmul.f32 0.5, %v2115_v61 }
 0x194   : > { %v1149_v35 = vmul.f32 %v1061_v53, %v2723_v56  ;;  %v736_v53 = vmul.f32 0.5, %v2113_v48  ;;  %2126 = vtanh.f32 %v687_v11  ;;  %v752_v48 = vmul.f32 0.5, %v2117_v63 }
 0x195   : > { %1250 = vrot.lane.b32.xlu0 %v1164_v52, %s2232_s19  ;;  %2128 = vtanh.f32 %v676_v60  ;;  %v734_v63 = vmul.f32 0.5, %v2119_v43 }
 0x196   : > { %1220 = vrot.lane.b32.xlu1 %v1149_v35, %s2232_s19  ;;  %v1055_v57 = vpop.permute.xlu0 %1054  ;;  %v2752_v28 = vadd.f32 0.5, %v736_v53  ;;  %2130 = vtanh.f32 %v677_v13  ;;  %v690_v13 = vmul.f32 0.5, %v2492_v46 }
 0x197   : > { %v1093_v8 = vpop.permute.xlu1 %1092  ;;  %v1146_v1 = vmul.f32 %v1055_v57, %v2733_v2  ;;  %2132 = vtanh.f32 %v674_v22 }
 0x198   : > { %v1165_v10 = vmul.f32 %v1093_v8, %v2729_v3  ;;  %v2748_v8 = vadd.f32 0.5, %v747_v40 }
 0x199   : > { %1214 = vrot.lane.b32.xlu0 %v1146_v1, %s2232_s19  ;;  %v2121_v57 = vpop.eup %2120 }
 0x19a   : > { %1252 = vrot.lane.b32.xlu1 %v1165_v10, %s2232_s19  ;;  %v1087_v35 = vpop.permute.xlu0 %1086  ;;  %v2123_v61 = vpop.eup %2122  ;;  %v753_v40 = vmul.f32 0.5, %v2121_v57 }
 0x19b   : > { %v1057_v18 = vpop.permute.xlu1 %1056  ;;  %v1162_v0 = vmul.f32 %v1087_v35, %v2739_v17  ;;  %v2760_v35 = vadd.f32 0.5, %v737_v30  ;;  %v2125_v53 = vpop.eup %2124  ;;  %v2771_v30 = vadd.f32 0.5, %v734_v63 }
 0x19c   : > { %v1147_v52 = vmul.f32 %v1057_v18, %v2742_v49  ;;  %v2757_v18 = vadd.f32 0.5, %v752_v48  ;;  %v735_v48 = vmul.f32 0.5, %v2123_v61  ;;  %v750_v57 = vmul.f32 0.5, %v2125_v53 }
 0x19d   : > { %1246 = vrot.lane.b32.xlu0 %v1162_v0, %s2232_s19  ;;  %v691_v61 = vmul.f32 0.5, %v2505_v50  ;;  %v693_v50 = vmul.f32 0.5, %v2596_v32 }
 0x19e   : > { %1216 = vrot.lane.b32.xlu1 %v1147_v52, %s2232_s19  ;;  %v1067_v10 = vpop.permute.xlu0 %1066  ;;  %v2127_v43 = vpop.eup %2126  ;;  %v2780_v63 = vadd.f32 0.5, %v735_v48 }
 0x19f   : > { %v1089_v11 = vpop.permute.xlu1 %1088  ;;  %v1152_v60 = vmul.f32 %v1067_v10, %v2752_v28 }
 0x1a0   : > { %v1163_v1 = vmul.f32 %v1089_v11, %v2748_v8  ;;  %v675_v11 = vmul.f32 0.5, %v2489_v45  ;;  %3260 = vst [vmem:[#allocation13_spill] sm:$0xff] %v2780_v63 }
 0x1a1   : > { %1226 = vrot.lane.b32.xlu0 %v1152_v60, %s2232_s19  ;;  %v2129_v60 = vpop.eup %2128 }
 0x1a2   : > { %1248 = vrot.lane.b32.xlu1 %v1163_v1, %s2232_s19  ;;  %v1099_v0 = vpop.permute.xlu0 %1098  ;;  %v2767_v1 = vadd.f32 0.5, %v753_v40  ;;  %2134 = vtanh.f32 %v675_v11  ;;  %v751_v40 = vmul.f32 0.5, %v2127_v43  ;;  %v740_v53 = vmul.f32 0.5, %v2129_v60  ;;  %v2131_v11 = vpop.eup %2130 }
 0x1a3   : > { %v1069_v52 = vpop.permute.xlu1 %1068  ;;  %v1168_v29 = vmul.f32 %v1099_v0, %v2757_v18  ;;  %2136 = vtanh.f32 %v690_v13  ;;  %v2777_v0 = vadd.f32 0.5, %v750_v57  ;;  %v741_v13 = vmul.f32 0.5, %v2131_v11  ;;  %v2133_v57 = vpop.eup %2132 }
 0x1a4   : > { %v1153_v10 = vmul.f32 %v1069_v52, %v2760_v35  ;;  %v692_v52 = vmul.f32 0.5, %v2580_v23  ;;  %v2786_v43 = vadd.f32 0.5, %v751_v40  ;;  %v2790_v48 = vadd.f32 0.5, %v740_v53 }
 0x1a5   : > { %1258 = vrot.lane.b32.xlu0 %v1168_v29, %s2232_s19  ;;  %v738_v32 = vmul.f32 0.5, %v2133_v57 }
 0x1a6   : > { %1228 = vrot.lane.b32.xlu1 %v1153_v10, %s2232_s19  ;;  %v1063_v42 = vpop.permute.xlu0 %1062  ;;  %2138 = vtanh.f32 %v692_v52  ;;  %3261 = vst [vmem:[#allocation14_spill] sm:$0xff] %v2786_v43  ;;  %3262 = vst [vmem:[#allocation15_spill] sm:$0xff] %v2790_v48 }
 0x1a7   : > { %v1101_v45 = vpop.permute.xlu1 %1100  ;;  %v1150_v46 = vmul.f32 %v1063_v42, %v2771_v30  ;;  %2140 = vtanh.f32 %v691_v61  ;;  %v2795_v61 = vadd.f32 0.5, %v741_v13 }
 0x1a8   : > { %v1169_v22 = vmul.f32 %v1101_v45, %v2767_v1  ;;  %2142 = vtanh.f32 %v693_v50 }
 0x1a9   : > { %1222 = vrot.lane.b32.xlu0 %v1150_v46, %s2232_s19  ;;  %3263 = vst [vmem:[#allocation16_spill] sm:$0xff] %v2795_v61 }
 0x1aa   : > { %1260 = vrot.lane.b32.xlu1 %v1169_v22, %s2232_s19  ;;  %v1095_v23 = vpop.permute.xlu0 %1094 }
 0x1ab   : > { %v1065_v10 = vpop.permute.xlu1 %1064  ;;  %v1166_v42 = vmul.f32 %v1095_v23, %v2777_v0 }
 0x1ac   : > { %v1151_v29 = vmul.f32 %v1065_v10, %v2780_v63  ;;  %v2135_v46 = vpop.eup %2134 }
 0x1ad   : > { %1254 = vrot.lane.b32.xlu0 %v1166_v42, %s2232_s19  ;;  %v2137_v40 = vpop.eup %2136 }
 0x1ae   : > { %1224 = vrot.lane.b32.xlu1 %v1151_v29, %s2232_s19  ;;  %v1075_v45 = vpop.permute.xlu0 %1074  ;;  %v739_v29 = vmul.f32 0.5, %v2135_v46  ;;  %v754_v42 = vmul.f32 0.5, %v2137_v40 }
 0x1af   : > { %v1097_v60 = vpop.permute.xlu1 %1096  ;;  %v1156_v22 = vmul.f32 %v1075_v45, %v2790_v48 }
 0x1b0   : > { %v1167_v52 = vmul.f32 %v1097_v60, %v2786_v43  ;;  %v2139_v23 = vpop.eup %2138  ;;  %v2800_v60 = vadd.f32 0.5, %v738_v32  ;;  %v2805_v43 = vadd.f32 0.5, %v739_v29 }
 0x1b1   : > { %1234 = vrot.lane.b32.xlu0 %v1156_v22, %s2232_s19  ;;  %v2141_v50 = vpop.eup %2140  ;;  %v2803_v22 = vadd.f32 0.5, %v754_v42 }
 0x1b2   : > { %1256 = vrot.lane.b32.xlu1 %v1167_v52, %s2232_s19  ;;  %v1107_v53 = vpop.permute.xlu0 %1106  ;;  %v756_v52 = vmul.f32 0.5, %v2139_v23  ;;  %v755_v48 = vmul.f32 0.5, %v2141_v50 }
 0x1b3   : > { %v1077_v11 = vpop.permute.xlu1 %1076 }
 0x1b4   : > { %v1157_v10 = vmul.f32 %v1077_v11, %v2795_v61  ;;  %v2143_v11 = vpop.eup %2142  ;;  %v2810_v63 = vadd.f32 0.5, %v755_v48  ;;  %v2812_v38 = vadd.f32 0.5, %v756_v52 }
 0x1b5   : > { %v757_v61 = vmul.f32 0.5, %v2143_v11  ;;  %v985_v11 = vmul.f32 %v2568_v20, %v2682_v62  ;;  %v1001_v20 = vmul.f32 %v2640_v25, %v2696_v44 }
 0x1b6   : > { %1236 = vrot.lane.b32.xlu1 %v1157_v10, %s2232_s19  ;;  %v1071_v45 = vpop.permute.xlu0 %1070  ;;  %v1172_v29 = vmul.f32 %v1107_v53, %v2812_v38 }
 0x1b7   : > { %v1109_v57 = vpop.permute.xlu1 %1108  ;;  %v1154_v13 = vmul.f32 %v1071_v45, %v2800_v60  ;;  %v2818_v50 = vadd.f32 0.5, %v757_v61  ;;  %v984_v45 = vmul.f32 %v2541_v7, %v2671_v14  ;;  %v1000_v61 = vmul.f32 %v2634_v19, %v2679_v4 }
 0x1b8   : > { %v982_v7 = vmul.f32 %v2522_v58, %v2688_v59  ;;  %v998_v19 = vmul.f32 %v2630_v9, %v2694_v51  ;;  %v983_v58 = vmul.f32 %v2539_v6, %v2704_v31  ;;  %v988_v9 = vmul.f32 %v2582_v26, %v2707_v54 }
 0x1b9   : > { %1230 = vrot.lane.b32.xlu0 %v1154_v13, %s2232_s19  ;;  %v1173_v48 = vmul.f32 %v1109_v57, %v2818_v50 }
 0x1ba   : > { %v1103_v40 = vpop.permute.xlu0 %1102 }
 0x1bb   : > { %v1073_v46 = vpop.permute.xlu1 %1072  ;;  %v1170_v32 = vmul.f32 %v1103_v40, %v2803_v22 }
 0x1bc   : > { %v1155_v10 = vmul.f32 %v1073_v46, %v2805_v43 }
 0x1bd   : > { %1262 = vrot.lane.b32.xlu0 %v1170_v32, %s2232_s19 }
 0x1be   : > { %1232 = vrot.lane.b32.xlu1 %v1155_v10, %s2232_s19 }
 0x1bf   : > { %v1105_v23 = vpop.permute.xlu1 %1104 }
 0x1c0   : > { %v1171_v42 = vmul.f32 %v1105_v23, %v2810_v63 }
 0x1c1   : > { %1266 = vrot.lane.b32.xlu0 %v1172_v29, %s2232_s19 }
 0x1c2   : > { %1264 = vrot.lane.b32.xlu1 %v1171_v42, %s2232_s19 }
 0x1c6   : > { %1268 = vrot.lane.b32.xlu1 %v1173_v48, %s2232_s19 }
 0x1f3   : > { %v1211_v13 = vpop.permute.xlu0 %1210 }
 0x1f4   : > { %v2826_v52 = vadd.f32 %v1211_v13, %v984_v45 }
 0x1f5   : > { %v1213_v57 = vpop.permute.xlu1 %1212 }
 0x1f6   : > { %2144 = vtanh.f32 %v2826_v52  ;;  %v2835_v40 = vadd.f32 %v1213_v57, %v985_v11 }
 0x1f7   : > { %v1243_v53 = vpop.permute.xlu0 %1242 }
 0x1f8   : > { %v2833_v46 = vadd.f32 %v1243_v53, %v1000_v61 }
 0x1fa   : > { %2146 = vtanh.f32 %v2833_v46 }
 0x1fb   : > { %v1207_v10 = vpop.permute.xlu0 %1206  ;;  %2148 = vtanh.f32 %v2835_v40 }
 0x1fc   : > { %v2841_v32 = vadd.f32 %v1207_v10, %v982_v7  ;;  %v1245_v29 = vpop.permute.xlu1 %1244  ;;  %v999_v7 = vmul.f32 %v2636_v21, %v2713_v12  ;;  %v989_v21 = vmul.f32 %v2604_v37, %v2723_v56 }
 0x1fd   : > { %v2848_v48 = vadd.f32 %v1245_v29, %v1001_v20 }
 0x1fe   : > { %2150 = vtanh.f32 %v2841_v32 }
 0x1ff   : > { %v1239_v42 = vpop.permute.xlu0 %1238  ;;  %2152 = vtanh.f32 %v2848_v48 }
 0x200   : > { %v2145_v23 = vpop.eup %2144  ;;  %v2850_v45 = vadd.f32 %v1239_v42, %v998_v19  ;;  %v1209_v25 = vpop.permute.xlu1 %1208  ;;  %v1004_v19 = vmul.f32 %v2642_v33, %v2720_v16  ;;  %v986_v33 = vmul.f32 %v2561_v15, %v2733_v2  ;;  %v987_v15 = vmul.f32 %v2584_v27, %v2742_v49 }
 0x201   : > { %1402 = vrot.lane.b32.xlu0 %v2145_v23, %s2232_s19  ;;  %v2859_v53 = vadd.f32 %v1209_v25, %v983_v58  ;;  %v1005_v25 = vmul.f32 %v2650_v39, %v2729_v3  ;;  %v1002_v39 = vmul.f32 %v2638_v24, %v2739_v17  ;;  %v1003_v24 = vmul.f32 %v2644_v34, %v2748_v8 }
 0x202   : > { %2154 = vtanh.f32 %v2850_v45  ;;  %v992_v27 = vmul.f32 %v2610_v41, %v2752_v28  ;;  %v1008_v34 = vmul.f32 %v2653_v47, %v2757_v18  ;;  %v993_v41 = vmul.f32 %v2621_v55, %v2760_v35 }
 0x203   : > { %v1219_v13 = vpop.permute.xlu0 %1218  ;;  %2156 = vtanh.f32 %v2859_v53  ;;  %v1009_v47 = vmul.f32 %v2662_v5, %v2767_v1  ;;  %v990_v55 = vmul.f32 %v2601_v36, %v2771_v30  ;;  %v3271_v5 = vld [vmem:[#allocation7_spill] sm:$0xff] }
 0x204   : > { %v2147_v61 = vpop.eup %2146  ;;  %v2861_v11 = vadd.f32 %v1219_v13, %v988_v9  ;;  %v1241_v6 = vpop.permute.xlu1 %1240 }
 0x205   : > { %1434 = vrot.lane.b32.xlu0 %v2147_v61, %s2232_s19  ;;  %v2149_v57 = vpop.eup %2148  ;;  %v2869_v10 = vadd.f32 %v1241_v6, %v999_v7 }
 0x206   : > { %1404 = vrot.lane.b32.xlu1 %v2149_v57, %s2232_s19  ;;  %2158 = vtanh.f32 %v2861_v11 }
 0x207   : > { %2160 = vtanh.f32 %v2869_v10  ;;  %v1251_v23 = vpop.permute.xlu0 %1250 }
 0x208   : > { %v2151_v26 = vpop.eup %2150  ;;  %v1221_v20 = vpop.permute.xlu1 %1220  ;;  %v2879_v58 = vadd.f32 %v1251_v23, %v1004_v19 }
 0x209   : > { %1398 = vrot.lane.b32.xlu0 %v2151_v26, %s2232_s19  ;;  %v2153_v29 = vpop.eup %2152  ;;  %v2877_v42 = vadd.f32 %v1221_v20, %v989_v21 }
 0x20a   : > { %1436 = vrot.lane.b32.xlu1 %v2153_v29, %s2232_s19 }
 0x20b   : > { %2162 = vtanh.f32 %v2877_v42  ;;  %v1215_v13 = vpop.permute.xlu0 %1214 }
 0x20c   : > { %v2155_v9 = vpop.eup %2154  ;;  %2164 = vtanh.f32 %v2879_v58  ;;  %v1253_v37 = vpop.permute.xlu1 %1252  ;;  %v2891_v7 = vadd.f32 %v1215_v13, %v986_v33 }
 0x20d   : > { %1430 = vrot.lane.b32.xlu0 %v2155_v9, %s2232_s19  ;;  %v2157_v61 = vpop.eup %2156  ;;  %v2889_v57 = vadd.f32 %v1253_v37, %v1005_v25 }
 0x20e   : > { %1400 = vrot.lane.b32.xlu1 %v2157_v61, %s2232_s19 }
 0x20f   : > { %2166 = vtanh.f32 %v2889_v57  ;;  %v1247_v19 = vpop.permute.xlu0 %1246 }
 0x210   : > { %v2159_v6 = vpop.eup %2158  ;;  %2168 = vtanh.f32 %v2891_v7  ;;  %v1217_v26 = vpop.permute.xlu1 %1216  ;;  %v2903_v23 = vadd.f32 %v1247_v19, %v1002_v39 }
 0x211   : > { %1410 = vrot.lane.b32.xlu0 %v2159_v6, %s2232_s19  ;;  %v2161_v21 = vpop.eup %2160  ;;  %v2901_v20 = vadd.f32 %v1217_v26, %v987_v15 }
 0x212   : > { %3264 = vst [vmem:[#allocation17_spill] sm:$0xff] %v2903_v23  ;;  %1432 = vrot.lane.b32.xlu1 %v2161_v21, %s2232_s19 }
 0x213   : > { %2170 = vtanh.f32 %v2901_v20  ;;  %v1227_v9 = vpop.permute.xlu0 %1226 }
 0x214   : > { %2172 = vtanh.f32 %v2903_v23  ;;  %v1249_v29 = vpop.permute.xlu1 %1248  ;;  %v2914_v37 = vadd.f32 %v1227_v9, %v992_v27 }
 0x215   : > { %v2163_v25 = vpop.eup %2162  ;;  %v2912_v33 = vadd.f32 %v1249_v29, %v1003_v24 }
 0x216   : > { %3266 = vst [vmem:[#allocation19_spill] sm:$0xff] %v2914_v37  ;;  %v2165_v13 = vpop.eup %2164  ;;  %1412 = vrot.lane.b32.xlu1 %v2163_v25, %s2232_s19 }
 0x217   : > { %3265 = vst [vmem:[#allocation18_spill] sm:$0xff] %v2912_v33  ;;  %2174 = vtanh.f32 %v2912_v33  ;;  %1442 = vrot.lane.b32.xlu0 %v2165_v13, %s2232_s19  ;;  %v1259_v6 = vpop.permute.xlu0 %1258  ;;  %v1006_v13 = vmul.f32 %v3271_v5, %v2777_v0  ;;  %v3279_v5 = vld [vmem:[#allocation4_spill] sm:$0xff] }
 0x218   : > { %2176 = vtanh.f32 %v2914_v37  ;;  %v1229_v61 = vpop.permute.xlu1 %1228  ;;  %v2926_v26 = vadd.f32 %v1259_v6, %v1008_v34  ;;  %v3272_v34 = vld [vmem:[#allocation13_spill] sm:$0xff] }
 0x219   : > { %v2167_v39 = vpop.eup %2166  ;;  %v2924_v15 = vadd.f32 %v1229_v61, %v993_v41  ;;  %v3273_v41 = vld [vmem:[#allocation2_spill] sm:$0xff] }
 0x21a   : > { %3268 = vst [vmem:[#allocation21_spill] sm:$0xff] %v2926_v26  ;;  %v2169_v19 = vpop.eup %2168  ;;  %1444 = vrot.lane.b32.xlu1 %v2167_v39, %s2232_s19  ;;  %v991_v36 = vmul.f32 %v3273_v41, %v3272_v34 }
 0x21b   : > { %3267 = vst [vmem:[#allocation20_spill] sm:$0xff] %v2924_v15  ;;  %2178 = vtanh.f32 %v2924_v15  ;;  %1406 = vrot.lane.b32.xlu0 %v2169_v19, %s2232_s19  ;;  %v1223_v24 = vpop.permute.xlu0 %1222 }
 0x21c   : > { %2180 = vtanh.f32 %v2926_v26  ;;  %v1261_v21 = vpop.permute.xlu1 %1260  ;;  %v2938_v9 = vadd.f32 %v1223_v24, %v990_v55  ;;  %v3277_v24 = vld [vmem:[#allocation8_spill] sm:$0xff] }
 0x21d   : > { %v2171_v27 = vpop.eup %2170  ;;  %v2936_v29 = vadd.f32 %v1261_v21, %v1009_v47  ;;  %v3276_v21 = vld [vmem:[#allocation14_spill] sm:$0xff] }
 0x21e   : > { %3270 = vst [vmem:[#allocation23_spill] sm:$0xff] %v2938_v9  ;;  %v2173_v25 = vpop.eup %2172  ;;  %1408 = vrot.lane.b32.xlu1 %v2171_v27, %s2232_s19  ;;  %v1007_v27 = vmul.f32 %v3277_v24, %v3276_v21  ;;  %v3282_v24 = vld [vmem:[#allocation16_spill] sm:$0xff] }
 0x21f   : > { %3269 = vst [vmem:[#allocation22_spill] sm:$0xff] %v2936_v29  ;;  %2182 = vtanh.f32 %v2936_v29  ;;  %1438 = vrot.lane.b32.xlu0 %v2173_v25, %s2232_s19  ;;  %v1255_v6 = vpop.permute.xlu0 %1254  ;;  %v3278_v25 = vld [vmem:[#allocation15_spill] sm:$0xff] }
 0x220   : > { %2184 = vtanh.f32 %v2938_v9  ;;  %v1225_v61 = vpop.permute.xlu1 %1224  ;;  %v2950_v47 = vadd.f32 %v1255_v6, %v1006_v13  ;;  %v996_v41 = vmul.f32 %v3279_v5, %v3278_v25 }
 0x221   : > { %v2175_v39 = vpop.eup %2174  ;;  %v2948_v19 = vadd.f32 %v1225_v61, %v991_v36 }
 0x222   : > { %3275 = vst [vmem:[#allocation13_spill] sm:$0xff] %v2950_v47  ;;  %v2177_v55 = vpop.eup %2176  ;;  %1440 = vrot.lane.b32.xlu1 %v2175_v39, %s2232_s19 }
 0x223   : > { %3274 = vst [vmem:[#allocation7_spill] sm:$0xff] %v2948_v19  ;;  %2186 = vtanh.f32 %v2948_v19  ;;  %1418 = vrot.lane.b32.xlu0 %v2177_v55, %s2232_s19  ;;  %v1235_v36 = vpop.permute.xlu0 %1234  ;;  %v3283_v19 = vld [vmem:[#allocation6_spill] sm:$0xff] }
 0x224   : > { %2188 = vtanh.f32 %v2950_v47  ;;  %v1257_v9 = vpop.permute.xlu1 %1256  ;;  %v2962_v6 = vadd.f32 %v1235_v36, %v996_v41  ;;  %v997_v55 = vmul.f32 %v3283_v19, %v3282_v24 }
 0x225   : > { %v2179_v61 = vpop.eup %2178  ;;  %v2960_v13 = vadd.f32 %v1257_v9, %v1007_v27 }
 0x226   : > { %3281 = vst [vmem:[#allocation14_spill] sm:$0xff] %v2962_v6  ;;  %v2181_v39 = vpop.eup %2180  ;;  %1420 = vrot.lane.b32.xlu1 %v2179_v61, %s2232_s19 }
 0x227   : > { %3280 = vst [vmem:[#allocation2_spill] sm:$0xff] %v2960_v13  ;;  %2190 = vtanh.f32 %v2960_v13  ;;  %1450 = vrot.lane.b32.xlu0 %v2181_v39, %s2232_s19 }
 0x228   : > { %2192 = vtanh.f32 %v2962_v6  ;;  %v1237_v5 = vpop.permute.xlu1 %1236 }
 0x229   : > { %v2183_v47 = vpop.eup %2182  ;;  %v2970_v29 = vadd.f32 %v1237_v5, %v997_v55  ;;  %v3285_v55 = vld [vmem:[#allocation10_spill] sm:$0xff] }
 0x22a   : > { %v2185_v9 = vpop.eup %2184  ;;  %1452 = vrot.lane.b32.xlu1 %v2183_v47, %s2232_s19  ;;  %v1012_v47 = vmul.f32 %v3285_v55, %v2812_v38 }
 0x22b   : > { %3284 = vst [vmem:[#allocation8_spill] sm:$0xff] %v2970_v29  ;;  %2194 = vtanh.f32 %v2970_v29  ;;  %1414 = vrot.lane.b32.xlu0 %v2185_v9, %s2232_s19  ;;  %v1231_v27 = vpop.permute.xlu0 %1230 }
 0x22d   : > { %v2187_v41 = vpop.eup %2186 }
 0x22e   : > { %v2189_v36 = vpop.eup %2188  ;;  %1416 = vrot.lane.b32.xlu1 %v2187_v41, %s2232_s19  ;;  %v3286_v41 = vld [vmem:[#allocation3_spill] sm:$0xff] }
 0x22f   : > { %1446 = vrot.lane.b32.xlu0 %v2189_v36, %s2232_s19  ;;  %v1263_v61 = vpop.permute.xlu0 %1262  ;;  %v994_v26 = vmul.f32 %v3286_v41, %v2800_v60  ;;  %v3287_v36 = vld [vmem:[#allocation12_spill] sm:$0xff] }
 0x230   : > { %v1233_v19 = vpop.permute.xlu1 %1232  ;;  %v1013_v15 = vmul.f32 %v3287_v36, %v2818_v50 }
 0x231   : > { %v2191_v39 = vpop.eup %2190  ;;  %v2988_v37 = vadd.f32 %v1231_v27, %v994_v26  ;;  %v3290_v26 = vld [vmem:[#allocation11_spill] sm:$0xff] }
 0x232   : > { %v2193_v6 = vpop.eup %2192  ;;  %1448 = vrot.lane.b32.xlu1 %v2191_v39, %s2232_s19  ;;  %v1011_v27 = vmul.f32 %v3290_v26, %v2810_v63 }
 0x233   : > { %1426 = vrot.lane.b32.xlu0 %v2193_v6, %s2232_s19  ;;  %v1267_v9 = vpop.permute.xlu0 %1266  ;;  %v3288_v6 = vld [vmem:[#allocation5_spill] sm:$0xff] }
 0x234   : > { %v1265_v5 = vpop.permute.xlu1 %1264  ;;  %v2981_v13 = vadd.f32 %v1267_v9, %v1012_v47  ;;  %v995_v55 = vmul.f32 %v3288_v6, %v2805_v43  ;;  %v3289_v47 = vld [vmem:[#allocation9_spill] sm:$0xff] }
 0x235   : > { %v2195_v29 = vpop.eup %2194  ;;  %v1010_v9 = vmul.f32 %v3289_v47, %v2803_v22  ;;  %v3006_v41 = vadd.f32 %v1265_v5, %v1011_v27 }
 0x236   : > { %1428 = vrot.lane.b32.xlu1 %v2195_v29, %s2232_s19  ;;  %2196 = vtanh.f32 %v2981_v13  ;;  %v2997_v23 = vadd.f32 %v1233_v19, %v995_v55 }
 0x237   : > { %v3001_v29 = vadd.f32 %v1263_v61, %v1010_v9 }
 0x238   : > { %v1269_v39 = vpop.permute.xlu1 %1268 }
 0x239   : > { %v2993_v33 = vadd.f32 %v1269_v39, %v1013_v15 }
 0x23b   : > { %2198 = vtanh.f32 %v2993_v33 }
 0x23c   : > { %2200 = vtanh.f32 %v2988_v37 }
 0x23d   : > { %2202 = vtanh.f32 %v2997_v23 }
 0x23e   : > { %2204 = vtanh.f32 %v3001_v29 }
 0x23f   : > { %2206 = vtanh.f32 %v3006_v41 }
 0x240   : > { %v2197_v15 = vpop.eup %2196 }
 0x241   : > { %1458 = vrot.lane.b32.xlu0 %v2197_v15, %s2232_s19 }
 0x245   : > { %v2199_v19 = vpop.eup %2198 }
 0x246   : > { %v2201_v36 = vpop.eup %2200  ;;  %1460 = vrot.lane.b32.xlu1 %v2199_v19, %s2232_s19 }
 0x247   : > { %1422 = vrot.lane.b32.xlu0 %v2201_v36, %s2232_s19  ;;  %v2203_v61 = vpop.eup %2202 }
 0x248   : > { %v2205_v39 = vpop.eup %2204 }
 0x249   : > { %v2207_v5 = vpop.eup %2206 }
 0x24a   : > { %1424 = vrot.lane.b32.xlu1 %v2203_v61, %s2232_s19 }
 0x24b   : > { %1454 = vrot.lane.b32.xlu0 %v2205_v39, %s2232_s19 }
 0x24e   : > { %1456 = vrot.lane.b32.xlu1 %v2207_v5, %s2232_s19 }
 0x273   : > { %v1403_v6 = vpop.permute.xlu0 %1402 }
 0x274   : > { %v1496_v55 = vmul.f32 %v1403_v6, %v2671_v14 }
 0x276   : > { %1562 = vrot.lane.b32.xlu0 %v1496_v55, %s2234_s23 }
 0x277   : > { %v1435_v47 = vpop.permute.xlu0 %1434 }
 0x278   : > { %v1512_v9 = vmul.f32 %v1435_v47, %v2679_v4  ;;  %v1405_v26 = vpop.permute.xlu1 %1404 }
 0x279   : > { %v1497_v27 = vmul.f32 %v1405_v26, %v2682_v62 }
 0x27a   : > { %1594 = vrot.lane.b32.xlu0 %v1512_v9, %s2234_s23 }
 0x27b   : > { %v1399_v15 = vpop.permute.xlu0 %1398  ;;  %1564 = vrot.lane.b32.xlu1 %v1497_v27, %s2234_s23 }
 0x27c   : > { %v1494_v19 = vmul.f32 %v1399_v15, %v2688_v59  ;;  %v1437_v36 = vpop.permute.xlu1 %1436 }
 0x27d   : > { %v1513_v14 = vmul.f32 %v1437_v36, %v2696_v44 }
 0x27e   : > { %1558 = vrot.lane.b32.xlu0 %v1494_v19, %s2234_s23 }
 0x27f   : > { %v1431_v61 = vpop.permute.xlu0 %1430  ;;  %1596 = vrot.lane.b32.xlu1 %v1513_v14, %s2234_s23 }
 0x280   : > { %v1510_v39 = vmul.f32 %v1431_v61, %v2694_v51  ;;  %v1401_v4 = vpop.permute.xlu1 %1400 }
 0x281   : > { %v1495_v62 = vmul.f32 %v1401_v4, %v2704_v31 }
 0x282   : > { %1590 = vrot.lane.b32.xlu0 %v1510_v39, %s2234_s23 }
 0x283   : > { %v1411_v5 = vpop.permute.xlu0 %1410  ;;  %1560 = vrot.lane.b32.xlu1 %v1495_v62, %s2234_s23 }
 0x284   : > { %v1500_v6 = vmul.f32 %v1411_v5, %v2707_v54  ;;  %v1433_v59 = vpop.permute.xlu1 %1432 }
 0x285   : > { %v1511_v44 = vmul.f32 %v1433_v59, %v2713_v12 }
 0x286   : > { %1570 = vrot.lane.b32.xlu0 %v1500_v6, %s2234_s23 }
 0x287   : > { %1592 = vrot.lane.b32.xlu1 %v1511_v44, %s2234_s23 }
 0x288   : > { %v1413_v51 = vpop.permute.xlu1 %1412 }
 0x289   : > { %v1501_v55 = vmul.f32 %v1413_v51, %v2723_v56  ;;  %v1443_v47 = vpop.permute.xlu0 %1442 }
 0x28a   : > { %v1516_v9 = vmul.f32 %v1443_v47, %v2720_v16 }
 0x28b   : > { %1572 = vrot.lane.b32.xlu1 %v1501_v55, %s2234_s23 }
 0x28c   : > { %v1445_v31 = vpop.permute.xlu1 %1444  ;;  %1602 = vrot.lane.b32.xlu0 %v1516_v9, %s2234_s23 }
 0x28d   : > { %v1517_v54 = vmul.f32 %v1445_v31, %v2729_v3  ;;  %v1407_v26 = vpop.permute.xlu0 %1406 }
 0x28e   : > { %v1498_v27 = vmul.f32 %v1407_v26, %v2733_v2 }
 0x28f   : > { %1604 = vrot.lane.b32.xlu1 %v1517_v54, %s2234_s23 }
 0x290   : > { %v1409_v12 = vpop.permute.xlu1 %1408  ;;  %1566 = vrot.lane.b32.xlu0 %v1498_v27, %s2234_s23 }
 0x291   : > { %v1499_v56 = vmul.f32 %v1409_v12, %v2742_v49  ;;  %v1439_v15 = vpop.permute.xlu0 %1438 }
 0x292   : > { %v1514_v16 = vmul.f32 %v1439_v15, %v2739_v17 }
 0x293   : > { %1568 = vrot.lane.b32.xlu1 %v1499_v56, %s2234_s23 }
 0x294   : > { %v1441_v19 = vpop.permute.xlu1 %1440  ;;  %1598 = vrot.lane.b32.xlu0 %v1514_v16, %s2234_s23 }
 0x295   : > { %v1515_v3 = vmul.f32 %v1441_v19, %v2748_v8  ;;  %v1419_v36 = vpop.permute.xlu0 %1418 }
 0x296   : > { %v1504_v2 = vmul.f32 %v1419_v36, %v2752_v28 }
 0x297   : > { %1600 = vrot.lane.b32.xlu1 %v1515_v3, %s2234_s23 }
 0x298   : > { %v1421_v14 = vpop.permute.xlu1 %1420  ;;  %1578 = vrot.lane.b32.xlu0 %v1504_v2, %s2234_s23 }
 0x299   : > { %v1505_v49 = vmul.f32 %v1421_v14, %v2760_v35  ;;  %v1451_v61 = vpop.permute.xlu0 %1450 }
 0x29a   : > { %v1520_v17 = vmul.f32 %v1451_v61, %v2757_v18 }
 0x29b   : > { %1580 = vrot.lane.b32.xlu1 %v1505_v49, %s2234_s23 }
 0x29c   : > { %v1453_v39 = vpop.permute.xlu1 %1452  ;;  %1610 = vrot.lane.b32.xlu0 %v1520_v17, %s2234_s23 }
 0x29d   : > { %v1521_v8 = vmul.f32 %v1453_v39, %v2767_v1  ;;  %v1415_v4 = vpop.permute.xlu0 %1414  ;;  %v3291_v39 = vld [vmem:[#allocation17_spill] sm:$0xff] }
 0x29e   : > { %v1502_v28 = vmul.f32 %v1415_v4, %v2771_v30  ;;  %v3292_v4 = vld [vmem:[#allocation18_spill] sm:$0xff] }
 0x29f   : > { %1612 = vrot.lane.b32.xlu1 %v1521_v8, %s2234_s23 }
 0x2a0   : > { %v1417_v62 = vpop.permute.xlu1 %1416  ;;  %1574 = vrot.lane.b32.xlu0 %v1502_v28, %s2234_s23 }
 0x2a1   : > { %v1503_v35 = vmul.f32 %v1417_v62, %v3272_v34  ;;  %v1447_v5 = vpop.permute.xlu0 %1446  ;;  %v3293_v62 = vld [vmem:[#allocation19_spill] sm:$0xff] }
 0x2a2   : > { %v1518_v18 = vmul.f32 %v1447_v5, %v2777_v0  ;;  %v3294_v5 = vld [vmem:[#allocation20_spill] sm:$0xff] }
 0x2a3   : > { %1576 = vrot.lane.b32.xlu1 %v1503_v35, %s2234_s23 }
 0x2a4   : > { %v1449_v6 = vpop.permute.xlu1 %1448  ;;  %1606 = vrot.lane.b32.xlu0 %v1518_v18, %s2234_s23 }
 0x2a5   : > { %v1519_v1 = vmul.f32 %v1449_v6, %v3276_v21  ;;  %v1427_v59 = vpop.permute.xlu0 %1426 }
 0x2a6   : > { %v1508_v30 = vmul.f32 %v1427_v59, %v3278_v25 }
 0x2a7   : > { %1608 = vrot.lane.b32.xlu1 %v1519_v1, %s2234_s23  ;;  %v3295_v1 = vld [vmem:[#allocation21_spill] sm:$0xff] }
 0x2a8   : > { %v1429_v44 = vpop.permute.xlu1 %1428  ;;  %1586 = vrot.lane.b32.xlu0 %v1508_v30, %s2234_s23 }
 0x2a9   : > { %v1509_v34 = vmul.f32 %v1429_v44, %v3282_v24  ;;  %v3296_v44 = vld [vmem:[#allocation22_spill] sm:$0xff] }
 0x2ab   : > { %1588 = vrot.lane.b32.xlu1 %v1509_v34, %s2234_s23 }
 0x2b3   : > { %v1459_v0 = vpop.permute.xlu0 %1458 }
 0x2b4   : > { %v1524_v26 = vmul.f32 %v1459_v0, %v2812_v38 }
 0x2b8   : > { %v1461_v51 = vpop.permute.xlu1 %1460 }
 0x2b9   : > { %v1423_v55 = vpop.permute.xlu0 %1422 }
 0x2ba   : > { %v1506_v47 = vmul.f32 %v1423_v55, %v2800_v60  ;;  %v1525_v60 = vmul.f32 %v1461_v51, %v2818_v50  ;;  %v3297_v51 = vld [vmem:[#allocation23_spill] sm:$0xff] }
 0x2bc   : > { %v1425_v9 = vpop.permute.xlu1 %1424  ;;  %1582 = vrot.lane.b32.xlu0 %v1506_v47, %s2234_s23 }
 0x2bd   : > { %v1507_v21 = vmul.f32 %v1425_v9, %v2805_v43  ;;  %v1455_v25 = vpop.permute.xlu0 %1454  ;;  %v3298_v9 = vld [vmem:[#allocation7_spill] sm:$0xff] }
 0x2be   : > { %v1522_v31 = vmul.f32 %v1455_v25, %v2803_v22 }
 0x2bf   : > { %1584 = vrot.lane.b32.xlu1 %v1507_v21, %s2234_s23 }
 0x2c0   : > { %v1457_v54 = vpop.permute.xlu1 %1456  ;;  %1614 = vrot.lane.b32.xlu0 %v1522_v31, %s2234_s23  ;;  %v3299_v31 = vld [vmem:[#allocation13_spill] sm:$0xff] }
 0x2c1   : > { %v1523_v24 = vmul.f32 %v1457_v54, %v2810_v63 }
 0x2c3   : > { %1616 = vrot.lane.b32.xlu1 %v1523_v24, %s2234_s23 }
 0x2c4   : > { %1618 = vrot.lane.b32.xlu0 %v1524_v26, %s2234_s23  ;;  %v3300_v26 = vld [vmem:[#allocation2_spill] sm:$0xff] }
 0x2c7   : > { %1620 = vrot.lane.b32.xlu1 %v1525_v60, %s2234_s23 }
 0x2e8   : > { %v1563_v38 = vpop.permute.xlu0 %1562 }
 0x2e9   : > { %v1657_v63 = vsel %vm1654_vm2, %v1563_v38, %v2826_v52 }
 0x2ea   : > { %1690 = vst.msk [vmem:[%s3085_s26 + $0x10] sm:$0xff] %vm1687_vm3, %v1657_v63  ;;  %v3301_v63 = vld [vmem:[#allocation14_spill] sm:$0xff] }
 0x2ec   : > { %v1595_v43 = vpop.permute.xlu0 %1594 }
 0x2ed   : > { %v1673_v22 = vsel %vm1654_vm2, %v1595_v43, %v2833_v46  ;;  %v1565_v50 = vpop.permute.xlu1 %1564 }
 0x2ee   : > { %1706 = vst.msk [vmem:[%s3085_s26 + $0x90] sm:$0xff] %vm1687_vm3, %v1673_v22  ;;  %v1658_v27 = vsel %vm1654_vm2, %v1565_v50, %v2835_v40  ;;  %v3302_v50 = vld [vmem:[#allocation8_spill] sm:$0xff] }
 0x2ef   : > { %1691 = vst.msk [vmem:[%s3085_s26 + $0x18] sm:$0xff] %vm1687_vm3, %v1658_v27 }
 0x2f0   : > { %v1559_v12 = vpop.permute.xlu0 %1558 }
 0x2f1   : > { %v1655_v52 = vsel %vm1654_vm2, %v1559_v12, %v2841_v32  ;;  %v1597_v56 = vpop.permute.xlu1 %1596 }
 0x2f2   : > { %1688 = vst.msk [vmem:[%s3085_s26] sm:$0xff] %vm1687_vm3, %v1655_v52  ;;  %v1674_v46 = vsel %vm1654_vm2, %v1597_v56, %v2848_v48 }
 0x2f3   : > { %1707 = vst.msk [vmem:[%s3085_s26 + $0x98] sm:$0xff] %vm1687_vm3, %v1674_v46 }
 0x2f4   : > { %v1591_v15 = vpop.permute.xlu0 %1590 }
 0x2f5   : > { %v1671_v40 = vsel %vm1654_vm2, %v1591_v15, %v2850_v45  ;;  %v1561_v16 = vpop.permute.xlu1 %1560 }
 0x2f6   : > { %1704 = vst.msk [vmem:[%s3085_s26 + $0x80] sm:$0xff] %vm1687_vm3, %v1671_v40  ;;  %v1656_v32 = vsel %vm1654_vm2, %v1561_v16, %v2859_v53 }
 0x2f7   : > { %1689 = vst.msk [vmem:[%s3085_s26 + $0x8] sm:$0xff] %vm1687_vm3, %v1656_v32 }
 0x2f8   : > { %v1571_v19 = vpop.permute.xlu0 %1570 }
 0x2f9   : > { %v1661_v48 = vsel %vm1654_vm2, %v1571_v19, %v2861_v11  ;;  %v1593_v3 = vpop.permute.xlu1 %1592 }
 0x2fa   : > { %1694 = vst.msk [vmem:[%s3085_s26 + $0x30] sm:$0xff] %vm1687_vm3, %v1661_v48  ;;  %v1672_v45 = vsel %vm1654_vm2, %v1593_v3, %v2869_v10 }
 0x2fb   : > { %1705 = vst.msk [vmem:[%s3085_s26 + $0x88] sm:$0xff] %vm1687_vm3, %v1672_v45 }
 0x2fd   : > { %v1573_v36 = vpop.permute.xlu1 %1572 }
 0x2fe   : > { %v1662_v53 = vsel %vm1654_vm2, %v1573_v36, %v2877_v42  ;;  %v1603_v2 = vpop.permute.xlu0 %1602 }
 0x2ff   : > { %1695 = vst.msk [vmem:[%s3085_s26 + $0x38] sm:$0xff] %vm1687_vm3, %v1662_v53  ;;  %v1677_v11 = vsel %vm1654_vm2, %v1603_v2, %v2879_v58 }
 0x300   : > { %1710 = vst.msk [vmem:[%s3085_s26 + $0xb0] sm:$0xff] %vm1687_vm3, %v1677_v11 }
 0x301   : > { %v1605_v14 = vpop.permute.xlu1 %1604 }
 0x302   : > { %v1678_v10 = vsel %vm1654_vm2, %v1605_v14, %v2889_v57  ;;  %v1567_v49 = vpop.permute.xlu0 %1566 }
 0x303   : > { %1711 = vst.msk [vmem:[%s3085_s26 + $0xb8] sm:$0xff] %vm1687_vm3, %v1678_v10  ;;  %v1659_v42 = vsel %vm1654_vm2, %v1567_v49, %v2891_v7 }
 0x304   : > { %1692 = vst.msk [vmem:[%s3085_s26 + $0x20] sm:$0xff] %vm1687_vm3, %v1659_v42 }
 0x305   : > { %v1569_v61 = vpop.permute.xlu1 %1568 }
 0x306   : > { %v1660_v58 = vsel %vm1654_vm2, %v1569_v61, %v2901_v20  ;;  %v1599_v17 = vpop.permute.xlu0 %1598 }
 0x307   : > { %1693 = vst.msk [vmem:[%s3085_s26 + $0x28] sm:$0xff] %vm1687_vm3, %v1660_v58  ;;  %v1675_v57 = vsel %vm1654_vm2, %v1599_v17, %v3291_v39 }
 0x308   : > { %1708 = vst.msk [vmem:[%s3085_s26 + $0xa0] sm:$0xff] %vm1687_vm3, %v1675_v57 }
 0x309   : > { %v1601_v8 = vpop.permute.xlu1 %1600 }
 0x30a   : > { %v1676_v7 = vsel %vm1654_vm2, %v1601_v8, %v3292_v4  ;;  %v1579_v28 = vpop.permute.xlu0 %1578 }
 0x30b   : > { %1709 = vst.msk [vmem:[%s3085_s26 + $0xa8] sm:$0xff] %vm1687_vm3, %v1676_v7  ;;  %v1665_v20 = vsel %vm1654_vm2, %v1579_v28, %v3293_v62 }
 0x30c   : > { %1698 = vst.msk [vmem:[%s3085_s26 + $0x50] sm:$0xff] %vm1687_vm3, %v1665_v20 }
 0x30d   : > { %v1581_v35 = vpop.permute.xlu1 %1580 }
 0x30e   : > { %v1666_v18 = vsel %vm1654_vm2, %v1581_v35, %v3294_v5  ;;  %v1611_v6 = vpop.permute.xlu0 %1610 }
 0x30f   : > { %1699 = vst.msk [vmem:[%s3085_s26 + $0x58] sm:$0xff] %vm1687_vm3, %v1666_v18  ;;  %v1681_v59 = vsel %vm1654_vm2, %v1611_v6, %v3295_v1 }
 0x310   : > { %1714 = vst.msk [vmem:[%s3085_s26 + $0xd0] sm:$0xff] %vm1687_vm3, %v1681_v59 }
 0x311   : > { %v1613_v30 = vpop.permute.xlu1 %1612 }
 0x312   : > { %v1682_v34 = vsel %vm1654_vm2, %v1613_v30, %v3296_v44  ;;  %v1575_v0 = vpop.permute.xlu0 %1574 }
 0x313   : > { %1715 = vst.msk [vmem:[%s3085_s26 + $0xd8] sm:$0xff] %vm1687_vm3, %v1682_v34  ;;  %v1663_v55 = vsel %vm1654_vm2, %v1575_v0, %v3297_v51 }
 0x314   : > { %1696 = vst.msk [vmem:[%s3085_s26 + $0x40] sm:$0xff] %vm1687_vm3, %v1663_v55 }
 0x315   : > { %v1577_v47 = vpop.permute.xlu1 %1576 }
 0x316   : > { %v1664_v21 = vsel %vm1654_vm2, %v1577_v47, %v3298_v9  ;;  %v1607_v25 = vpop.permute.xlu0 %1606 }
 0x317   : > { %1697 = vst.msk [vmem:[%s3085_s26 + $0x48] sm:$0xff] %vm1687_vm3, %v1664_v21  ;;  %v1679_v54 = vsel %vm1654_vm2, %v1607_v25, %v3299_v31 }
 0x318   : > { %1712 = vst.msk [vmem:[%s3085_s26 + $0xc0] sm:$0xff] %vm1687_vm3, %v1679_v54 }
 0x319   : > { %v1609_v24 = vpop.permute.xlu1 %1608 }
 0x31a   : > { %v1680_v60 = vsel %vm1654_vm2, %v1609_v24, %v3300_v26  ;;  %v1587_v38 = vpop.permute.xlu0 %1586 }
 0x31b   : > { %1713 = vst.msk [vmem:[%s3085_s26 + $0xc8] sm:$0xff] %vm1687_vm3, %v1680_v60  ;;  %v1669_v43 = vsel %vm1654_vm2, %v1587_v38, %v3301_v63 }
 0x31c   : > { %1702 = vst.msk [vmem:[%s3085_s26 + $0x70] sm:$0xff] %vm1687_vm3, %v1669_v43 }
 0x31d   : > { %v1589_v22 = vpop.permute.xlu1 %1588 }
 0x31e   : > { %v1670_v27 = vsel %vm1654_vm2, %v1589_v22, %v3302_v50 }
 0x31f   : > { %1703 = vst.msk [vmem:[%s3085_s26 + $0x78] sm:$0xff] %vm1687_vm3, %v1670_v27 }
 0x32e   : > { %v1583_v12 = vpop.permute.xlu0 %1582 }
 0x32f   : > { %v1667_v52 = vsel %vm1654_vm2, %v1583_v12, %v2988_v37 }
 0x330   : > { %1700 = vst.msk [vmem:[%s3085_s26 + $0x60] sm:$0xff] %vm1687_vm3, %v1667_v52 }
 0x331   : > { %v1585_v56 = vpop.permute.xlu1 %1584 }
 0x332   : > { %v1668_v46 = vsel %vm1654_vm2, %v1585_v56, %v2997_v23  ;;  %v1615_v15 = vpop.permute.xlu0 %1614 }
 0x333   : > { %1701 = vst.msk [vmem:[%s3085_s26 + $0x68] sm:$0xff] %vm1687_vm3, %v1668_v46  ;;  %v1683_v40 = vsel %vm1654_vm2, %v1615_v15, %v3001_v29 }
 0x334   : > { %1716 = vst.msk [vmem:[%s3085_s26 + $0xe0] sm:$0xff] %vm1687_vm3, %v1683_v40 }
 0x335   : > { %v1617_v16 = vpop.permute.xlu1 %1616 }
 0x336   : > { %v1684_v32 = vsel %vm1654_vm2, %v1617_v16, %v3006_v41  ;;  %v1619_v37 = vpop.permute.xlu0 %1618 }
 0x337   : > { %1717 = vst.msk [vmem:[%s3085_s26 + $0xe8] sm:$0xff] %vm1687_vm3, %v1684_v32  ;;  %v1685_v19 = vsel %vm1654_vm2, %v1619_v37, %v2981_v13 }
 0x338   : > { %1718 = vst.msk [vmem:[%s3085_s26 + $0xf0] sm:$0xff] %vm1687_vm3, %v1685_v19 }
 0x339   : > { %v1621_v23 = vpop.permute.xlu1 %1620 }
 0x33a   : > { %v1686_v48 = vsel %vm1654_vm2, %v1621_v23, %v2993_v33 }
 0x33b   : > { %1719 = vst.msk [vmem:[%s3085_s26 + $0xf8] sm:$0xff] %vm1687_vm3, %v1686_v48 }
 0x33c PF: > { %s14_s17 = sadd.s32 1, %s2230_s17   ;;  %s3303_s15 = smov %s2226_s16 }
 0x33d   : > { %p11_p5 = scmp.ge.s32.totalorder %s14_s17, 4   ;;  %s3304_s16 = smov %s3306_s18 }
 0x33f   :  { %13 = sbr.rel (!%p11_p5) target bundleno = 2 (0x2), region = 69 }

</bundles_post_ra>
